<compile_context>
chip_gen: v6e
topology: v6e:2x2x1
jax: 0.10.0
libtpu: 0.0.40
codegen_flags: <defaults>
</compile_context>

<pallas_src>
import functools

import jax
import jax.numpy as jnp
from jax import lax
from jax.experimental import pallas as pl
from jax.experimental.pallas import tpu as pltpu


def _vmem_limit(nbytes):
    """Explicit scoped-VMEM budget: >= 32 MiB, <= v7x physical 64 MiB."""
    return int(min(64 << 20, max(32 << 20, 2 * nbytes)))


# -----------------------------------------------------------------------------
# Backbone stand-in: 3x3 conv (stride=1, pad=1) + ReLU, row-tiled grid.
# Emits both the NCHW f32 map (module contract) and the NHWC f32 map used by
# the point gather -- no wrapper-side full-map transpose.
# -----------------------------------------------------------------------------
def _conv3x3_kernel(tile_h, W, C_in, C_out, xpad_ref, w_ref, b_ref,
                    o_nchw_ref, o_nhwc_ref, x9_ref):
    # xpad_ref:   (H+2, W+2, C_in) f32   -- whole padded image of this batch elem
    # w_ref:      (9*C_in, C_out) bf16   -- tap-major conv weights
    # b_ref:      (1, C_out) f32
    # o_nchw_ref: (C_out, tile_h*W) f32  -- lane-dense NCHW row-tile
    # o_nhwc_ref: (tile_h*W, C_out) f32  -- NHWC row-tile (gather source)
    # x9_ref:     (tile_h*W, 9*C_in) f32 VMEM scratch (in-VMEM im2col)
    h0 = pl.multiple_of(pl.program_id(1) * tile_h, tile_h)

    # In-VMEM im2col: pack the 9 shifted taps along the channel axis.
    for kh in range(3):
        for kw in range(3):
            tap = xpad_ref[pl.ds(h0 + kh, tile_h), pl.ds(kw, W), :]
            j = kh * 3 + kw
            x9_ref[:, j * C_in:(j + 1) * C_in] = tap.reshape(tile_h * W, C_in)

    # One bf16 cast + one K = 9*C_in MXU matmul (f32 accumulate).
    x2 = x9_ref[...].astype(jnp.bfloat16)
    acc = jnp.dot(x2, w_ref[...], preferred_element_type=jnp.float32)
    y = jnp.maximum(acc + b_ref[...], 0.0)              # bias + ReLU in f32

    o_nchw_ref[...] = y.T                               # (C_out, tile_h*W), lane-dense
    o_nhwc_ref[...] = y                                 # (tile_h*W, C_out)


def _pick_tile_h(H, W, target_rows=8192):
    """Largest divisor of H with ~target_rows output rows per grid step and a
    lane-dense (tile_h*W % 128 == 0) NCHW store; falls back to full H."""
    cap = max(1, target_rows // max(W, 1))
    best = None
    for t in range(1, H + 1):
        if H % t == 0 and t <= cap and (t * W) % 128 == 0:
            best = t
    return best if best is not None else H


def conv3x3_relu_pallas(img_nchw, w_oihw, bias, tile_h=None):
    """3x3 conv (stride=1, pad=1) + ReLU.

    Returns (feat_nchw f32 (B, C_out, H, W), feat_flat f32 (B, H*W, C_out)).
    """
    B, C_in, H, W = img_nchw.shape
    C_out = w_oihw.shape[0]
    if tile_h is None:
        tile_h = _pick_tile_h(H, W)
    assert H % tile_h == 0, "tile_h must divide H"
    assert (tile_h * W) % 128 == 0 or tile_h == H, "need lane-dense NCHW tile"
    n_h = H // tile_h

    x = jnp.transpose(img_nchw, (0, 2, 3, 1))                    # NHWC (C_in small)
    xpad = jnp.pad(x, ((0, 0), (1, 1), (1, 1), (0, 0)))          # (B, H+2, W+2, C_in)
    # PyTorch conv weight (C_out, C_in, 3, 3) -> tap-major (9*C_in, C_out) bf16.
    w9 = jnp.transpose(w_oihw, (2, 3, 1, 0)).reshape(9 * C_in, C_out)
    w9 = w9.astype(jnp.bfloat16)
    b2 = bias.reshape(1, C_out).astype(jnp.float32)

    vmem_need = (2 * ((H + 2) * (W + 2) * C_in * 4
                      + 9 * C_in * C_out * 2 + C_out * 4
                      + C_out * tile_h * W * 4
                      + tile_h * W * C_out * 4)
                 + tile_h * W * 9 * C_in * 4
                 + 4 * tile_h * W * C_out * 4)

    kernel = functools.partial(_conv3x3_kernel, tile_h, W, C_in, C_out)
    feat_nchw_flat, feat_nhwc_flat = pl.pallas_call(
        kernel,
        out_shape=(
            jax.ShapeDtypeStruct((B, C_out, H * W), jnp.float32),   # NCHW (flat HW)
            jax.ShapeDtypeStruct((B, H * W, C_out), jnp.float32),   # NHWC (flat HW)
        ),
        grid=(B, n_h),
        in_specs=[
            # Whole padded image per batch elem (block index constant across h,
            # so it is not re-DMA'd per row tile).
            # TODO(synk): switch to a row-band-with-halo fetch if a real
            # multi-channel backbone makes the full image too big for VMEM.
            pl.BlockSpec((None, H + 2, W + 2, C_in), lambda b, h: (b, 0, 0, 0)),
            pl.BlockSpec((9 * C_in, C_out), lambda b, h: (0, 0)),
            pl.BlockSpec((1, C_out), lambda b, h: (0, 0)),
        ],
        out_specs=(
            pl.BlockSpec((None, C_out, tile_h * W), lambda b, h: (b, 0, h)),
            pl.BlockSpec((None, tile_h * W, C_out), lambda b, h: (b, h, 0)),
        ),
        scratch_shapes=[pltpu.VMEM((tile_h * W, 9 * C_in), jnp.float32)],
        compiler_params=pltpu.CompilerParams(
            dimension_semantics=("parallel", "parallel"),
            vmem_limit_bytes=_vmem_limit(vmem_need)),
        cost_estimate=pl.CostEstimate(
            flops=2 * B * H * W * 9 * C_in * C_out,
            transcendentals=0,
            bytes_accessed=int(B * (H + 2) * (W + 2) * C_in * 4
                               + 9 * C_in * C_out * 2
                               + B * H * W * C_out * 8)),
    )(xpad, w9, b2)

    return feat_nchw_flat.reshape(B, C_out, H, W), feat_nhwc_flat


# -----------------------------------------------------------------------------
# Chunked scalar-prefetch DMA gather of point features from HBM + fused
# (lane-padded) dual classifier head.
# -----------------------------------------------------------------------------
def _gather_heads_kernel(chunk, n_pad, n_ring, idx_ref, feat_hbm, w_ref, b_ref,
                         feats_ref, logits_ref, gbuf, sems):
    # idx_ref:    (B * n_pad,) int32 SMEM (scalar prefetch), pre-clamped u*W+v
    # feat_hbm:   (B, H*W, C) f32 ref left in HBM (memory_space=ANY)
    # w_ref:      (C, NC_PAD) bf16 fused head weights   b_ref: (1, NC_PAD) f32
    # feats_ref:  (chunk, C) f32 out   logits_ref: (chunk, NC_PAD) f32 out
    # gbuf:       (chunk, C) f32 VMEM scratch   sems: (n_ring,) DMA semaphores
    b = pl.program_id(0)
    c = pl.program_id(1)
    base = b * n_pad + c * chunk

    def make_cp(i):
        row = idx_ref[base + i]
        return pltpu.make_async_copy(
            feat_hbm.at[b, pl.ds(row, 1), :],
            gbuf.at[pl.ds(i, 1), :],
            sems.at[i & (n_ring - 1)])

    def issue(i, carry):
        make_cp(i).start()
        return carry

    lax.fori_loop(0, chunk, issue, 0, unroll=8)

    def wait(i, carry):
        make_cp(i).wait()            # identical descriptor to the start()
        return carry

    lax.fori_loop(0, chunk, wait, 0, unroll=8)

    g = gbuf[...]                                                 # (chunk, C) f32
    feats_ref[...] = g
    logits_ref[...] = (jnp.dot(g.astype(jnp.bfloat16), w_ref[...],
                               preferred_element_type=jnp.float32)
                       + b_ref[...])


def gather_and_heads(feat_flat, img_indices, H, W, w1, b1, w2, b2, chunk=128):
    B, HW, C = feat_flat.shape
    N = img_indices.shape[1]
    nc = w1.shape[0]
    nc_pad = max(128, ((2 * nc + 127) // 128) * 128)

    chunk = max(8, min(chunk, ((N + 7) // 8) * 8))
    n_chunks = -(-N // chunk)
    n_pad = n_chunks * chunk

    # Clamp + flatten indices in the wrapper (cheap int ops, 1-D SMEM table).
    u = jnp.clip(img_indices[..., 0], 0, H - 1)
    v = jnp.clip(img_indices[..., 1], 0, W - 1)
    flat_idx = (u * W + v).astype(jnp.int32)                      # (B, N)
    flat_idx = jnp.pad(flat_idx, ((0, 0), (0, n_pad - N)))        # pad rows -> idx 0
    flat_idx = flat_idx.reshape(B * n_pad)

    # Fuse the two nn.Linear heads into one lane-dense (C, 128) bf16 matmul.
    w12 = jnp.concatenate([w1.T, w2.T], axis=1)                   # (C, 2*nc)
    w12 = jnp.pad(w12, ((0, 0), (0, nc_pad - 2 * nc))).astype(jnp.bfloat16)
    b12 = jnp.concatenate([b1, b2])
    b12 = jnp.pad(b12, (0, nc_pad - 2 * nc)).reshape(1, nc_pad).astype(jnp.float32)

    n_ring = 8
    vmem_need = (2 * (C * nc_pad * 2 + nc_pad * 4
                      + chunk * C * 4 + chunk * nc_pad * 4)
                 + chunk * C * 4 + 4 * chunk * nc_pad * 4)

    kernel = functools.partial(_gather_heads_kernel, chunk, n_pad, n_ring)
    grid_spec = pltpu.PrefetchScalarGridSpec(
        num_scalar_prefetch=1,
        grid=(B, n_chunks),
        in_specs=[
            pl.BlockSpec(memory_space=pl.ANY),                    # features stay in HBM
            pl.BlockSpec((C, nc_pad), lambda b, c, idx: (0, 0)),
            pl.BlockSpec((1, nc_pad), lambda b, c, idx: (0, 0)),
        ],
        out_specs=(
            pl.BlockSpec((None, chunk, C), lambda b, c, idx: (b, c, 0)),
            pl.BlockSpec((None, chunk, nc_pad), lambda b, c, idx: (b, c, 0)),
        ),
        scratch_shapes=[
            pltpu.VMEM((chunk, C), jnp.float32),
            pltpu.SemaphoreType.DMA((n_ring,)),
        ],
    )
    feats, logits = pl.pallas_call(
        kernel,
        out_shape=(
            jax.ShapeDtypeStruct((B, n_pad, C), jnp.float32),
            jax.ShapeDtypeStruct((B, n_pad, nc_pad), jnp.float32),
        ),
        grid_spec=grid_spec,
        compiler_params=pltpu.CompilerParams(
            dimension_semantics=("parallel", "parallel"),
            vmem_limit_bytes=_vmem_limit(vmem_need)),
        cost_estimate=pl.CostEstimate(
            flops=2 * B * n_pad * C * nc_pad,
            transcendentals=0,
            bytes_accessed=int(B * n_pad * (2 * C * 4 + nc_pad * 4)
                               + C * nc_pad * 2)),
    )(flat_idx, feat_flat, w12, b12)

    # Equivalent of torch.cat(img_feats, 0): batch-major concatenation.
    feats = feats[:, :N, :].reshape(B * N, C)
    logits = logits[:, :N, :].reshape(B * N, nc_pad)
    return feats, logits[:, :nc], logits[:, nc:2 * nc]


# -----------------------------------------------------------------------------
# Full Net2DSeg forward (dual_head=True).
# -----------------------------------------------------------------------------
def net2dseg_forward(data_batch, params, conv_tile_h=None):
    img = data_batch["img"]                      # (B, C_in, H, W), NCHW
    img_indices = data_batch["img_indices"]      # (B, N, 2) int32 (u, v)
    _, _, H, W = img.shape

    feat_nchw, feat_flat = conv3x3_relu_pallas(
        img, params["conv_w"], params["conv_b"], tile_h=conv_tile_h)

    feats, seg_logit, seg_logit2 = gather_and_heads(
        feat_flat, img_indices, H, W,
        params["lin1_w"], params["lin1_b"], params["lin2_w"], params["lin2_b"])

    return {"feat": feat_nchw, "feats": feats,
            "seg_logit": seg_logit, "seg_logit2": seg_logit2}


# -----------------------------------------------------------------------------
# Pure-JAX (f32) reference for correctness checking.
# -----------------------------------------------------------------------------
def ref_forward(data_batch, params):
    img = data_batch["img"]
    idx = data_batch["img_indices"]
    B, _, H, W = img.shape
    feat = lax.conv_general_dilated(
        img, params["conv_w"], (1, 1), "SAME",
        dimension_numbers=("NCHW", "OIHW", "NCHW"))
    feat = jnp.maximum(feat + params["conv_b"][None, :, None, None], 0.0)
    perm = jnp.transpose(feat, (0, 2, 3, 1))
    feats = []
    for i in range(B):
        u = jnp.clip(idx[i, :, 0], 0, H - 1)
        v = jnp.clip(idx[i, :, 1], 0, W - 1)
        feats.append(perm[i][u, v])
    feats = jnp.concatenate(feats, 0)
    l1 = feats @ params["lin1_w"].T + params["lin1_b"]
    l2 = feats @ params["lin2_w"].T + params["lin2_b"]
    return {"feat": feat, "feats": feats, "seg_logit": l1, "seg_logit2": l2}


if __name__ == "__main__":
    B, C_in, H, W = 2, 4, 16, 16
    N_pts = 8
    num_classes = 5
    feat_channels = 64

    key = jax.random.PRNGKey(0)
    k = jax.random.split(key, 8)
    img = jax.random.normal(k[0], (B, C_in, H, W), jnp.float32)
    img_indices = jax.random.randint(
        k[1], (B, N_pts, 2), -2, H + 2).astype(jnp.int32)  # includes OOB -> clamp path

    params = {
        "conv_w": 0.1 * jax.random.normal(k[2], (feat_channels, C_in, 3, 3), jnp.float32),
        "conv_b": 0.1 * jax.random.normal(k[3], (feat_channels,), jnp.float32),
        "lin1_w": 0.1 * jax.random.normal(k[4], (num_classes, feat_channels), jnp.float32),
        "lin1_b": 0.1 * jax.random.normal(k[5], (num_classes,), jnp.float32),
        "lin2_w": 0.1 * jax.random.normal(k[6], (num_classes, feat_channels), jnp.float32),
        "lin2_b": 0.1 * jax.random.normal(k[7], (num_classes,), jnp.float32),
    }

    data_batch = {"img": img, "img_indices": img_indices}

    # conv_tile_h=8 -> 2 row-tiles per image at H=16 (exercises the tiled grid).
    preds = net2dseg_forward(data_batch, params, conv_tile_h=8)
    jax.block_until_ready(preds)

    ref = ref_forward(data_batch, params)
    # bf16 MXU inputs (f32 accumulate) -> small numerical deltas vs f32 reference.
    for name in ("feat", "feats", "seg_logit", "seg_logit2"):
        assert preds[name].shape == ref[name].shape, name
        assert jnp.allclose(preds[name], ref[name], atol=3e-2, rtol=3e-2), name

    print("KERNEL_OK")
</pallas_src>

<mosaic_0001>
module attributes {stable_mosaic.version = 11 : i64} {
  func.func @_conv3x3_kernel(%arg0: i32, %arg1: i32, %arg2: memref<1x18x18x4xf32, #tpu.memory_space<vmem>>, %arg3: memref<36x64xbf16, #tpu.memory_space<vmem>>, %arg4: memref<1x64xf32, #tpu.memory_space<vmem>>, %arg5: memref<1x64x128xf32, #tpu.memory_space<vmem>>, %arg6: memref<1x128x64xf32, #tpu.memory_space<vmem>>, %arg7: memref<128x36xf32, #tpu.memory_space<vmem>>) attributes {dimension_semantics = [#tpu.dimension_semantics<parallel>, #tpu.dimension_semantics<parallel>], iteration_bounds = array<i64: 2, 2>, scalar_prefetch = 0 : i64, scratch_operands = 1 : i64, tpu.core_type = #tpu.core_type<tc>, window_params = [{transform_indices = @transform_0, window_bounds = array<i64: 1, 18, 18, 4>}, {pipeline_mode = #tpu.pipeline_mode<synchronous>, transform_indices = @transform_1, window_bounds = array<i64: 36, 64>}, {pipeline_mode = #tpu.pipeline_mode<synchronous>, transform_indices = @transform_2, window_bounds = array<i64: 1, 64>}, {transform_indices = @transform_3, window_bounds = array<i64: 1, 64, 128>}, {transform_indices = @transform_4, window_bounds = array<i64: 1, 128, 64>}]} {
    %c8_i32 = arith.constant 8 : i32
    %0 = arith.muli %arg1, %c8_i32 : i32
    %1 = tpu.assume_multiple %0, 8 : i32
    %c0_i32 = arith.constant 0 : i32
    %2 = arith.addi %1, %c0_i32 : i32
    %c0 = arith.constant 0 : index
    %3 = arith.index_cast %2 : i32 to index
    %c0_0 = arith.constant 0 : index
    %c0_1 = arith.constant 0 : index
    %4 = vector.load %arg2[%c0, %3, %c0_0, %c0_1] : memref<1x18x18x4xf32, #tpu.memory_space<vmem>>, vector<1x8x16x4xf32>
    %5 = vector.shape_cast %4 : vector<1x8x16x4xf32> to vector<8x16x4xf32>
    %6 = vector.shape_cast %5 : vector<8x16x4xf32> to vector<128x4xf32>
    %c0_2 = arith.constant 0 : index
    %c0_3 = arith.constant 0 : index
    %7 = vector.load %arg7[%c0_2, %c0_3] : memref<128x36xf32, #tpu.memory_space<vmem>>, vector<128x4xf32>
    tpu.vector_store %arg7[%c0_2, %c0_3], %6 {strides = array<i32>} : memref<128x36xf32, #tpu.memory_space<vmem>>, vector<128x4xf32>,
    %c0_i32_4 = arith.constant 0 : i32
    %8 = arith.addi %1, %c0_i32_4 : i32
    %c0_5 = arith.constant 0 : index
    %9 = arith.index_cast %8 : i32 to index
    %c1 = arith.constant 1 : index
    %c0_6 = arith.constant 0 : index
    %10 = vector.load %arg2[%c0_5, %9, %c1, %c0_6] : memref<1x18x18x4xf32, #tpu.memory_space<vmem>>, vector<1x8x16x4xf32>
    %11 = vector.shape_cast %10 : vector<1x8x16x4xf32> to vector<8x16x4xf32>
    %12 = vector.shape_cast %11 : vector<8x16x4xf32> to vector<128x4xf32>
    %c0_7 = arith.constant 0 : index
    %c4 = arith.constant 4 : index
    %13 = vector.load %arg7[%c0_7, %c4] : memref<128x36xf32, #tpu.memory_space<vmem>>, vector<128x4xf32>
    tpu.vector_store %arg7[%c0_7, %c4], %12 {strides = array<i32>} : memref<128x36xf32, #tpu.memory_space<vmem>>, vector<128x4xf32>,
    %c0_i32_8 = arith.constant 0 : i32
    %14 = arith.addi %1, %c0_i32_8 : i32
    %c0_9 = arith.constant 0 : index
    %15 = arith.index_cast %14 : i32 to index
    %c2 = arith.constant 2 : index
    %c0_10 = arith.constant 0 : index
    %16 = vector.load %arg2[%c0_9, %15, %c2, %c0_10] : memref<1x18x18x4xf32, #tpu.memory_space<vmem>>, vector<1x8x16x4xf32>
    %17 = vector.shape_cast %16 : vector<1x8x16x4xf32> to vector<8x16x4xf32>
    %18 = vector.shape_cast %17 : vector<8x16x4xf32> to vector<128x4xf32>
    %c0_11 = arith.constant 0 : index
    %c8 = arith.constant 8 : index
    %19 = vector.load %arg7[%c0_11, %c8] : memref<128x36xf32, #tpu.memory_space<vmem>>, vector<128x4xf32>
    tpu.vector_store %arg7[%c0_11, %c8], %18 {strides = array<i32>} : memref<128x36xf32, #tpu.memory_space<vmem>>, vector<128x4xf32>,
    %c1_i32 = arith.constant 1 : i32
    %20 = arith.addi %1, %c1_i32 : i32
    %c0_12 = arith.constant 0 : index
    %21 = arith.index_cast %20 : i32 to index
    %c0_13 = arith.constant 0 : index
    %c0_14 = arith.constant 0 : index
    %22 = vector.load %arg2[%c0_12, %21, %c0_13, %c0_14] : memref<1x18x18x4xf32, #tpu.memory_space<vmem>>, vector<1x8x16x4xf32>
    %23 = vector.shape_cast %22 : vector<1x8x16x4xf32> to vector<8x16x4xf32>
    %24 = vector.shape_cast %23 : vector<8x16x4xf32> to vector<128x4xf32>
    %c0_15 = arith.constant 0 : index
    %c12 = arith.constant 12 : index
    %25 = vector.load %arg7[%c0_15, %c12] : memref<128x36xf32, #tpu.memory_space<vmem>>, vector<128x4xf32>
    tpu.vector_store %arg7[%c0_15, %c12], %24 {strides = array<i32>} : memref<128x36xf32, #tpu.memory_space<vmem>>, vector<128x4xf32>,
    %c1_i32_16 = arith.constant 1 : i32
    %26 = arith.addi %1, %c1_i32_16 : i32
    %c0_17 = arith.constant 0 : index
    %27 = arith.index_cast %26 : i32 to index
    %c1_18 = arith.constant 1 : index
    %c0_19 = arith.constant 0 : index
    %28 = vector.load %arg2[%c0_17, %27, %c1_18, %c0_19] : memref<1x18x18x4xf32, #tpu.memory_space<vmem>>, vector<1x8x16x4xf32>
    %29 = vector.shape_cast %28 : vector<1x8x16x4xf32> to vector<8x16x4xf32>
    %30 = vector.shape_cast %29 : vector<8x16x4xf32> to vector<128x4xf32>
    %c0_20 = arith.constant 0 : index
    %c16 = arith.constant 16 : index
    %31 = vector.load %arg7[%c0_20, %c16] : memref<128x36xf32, #tpu.memory_space<vmem>>, vector<128x4xf32>
    tpu.vector_store %arg7[%c0_20, %c16], %30 {strides = array<i32>} : memref<128x36xf32, #tpu.memory_space<vmem>>, vector<128x4xf32>,
    %c1_i32_21 = arith.constant 1 : i32
    %32 = arith.addi %1, %c1_i32_21 : i32
    %c0_22 = arith.constant 0 : index
    %33 = arith.index_cast %32 : i32 to index
    %c2_23 = arith.constant 2 : index
    %c0_24 = arith.constant 0 : index
    %34 = vector.load %arg2[%c0_22, %33, %c2_23, %c0_24] : memref<1x18x18x4xf32, #tpu.memory_space<vmem>>, vector<1x8x16x4xf32>
    %35 = vector.shape_cast %34 : vector<1x8x16x4xf32> to vector<8x16x4xf32>
    %36 = vector.shape_cast %35 : vector<8x16x4xf32> to vector<128x4xf32>
    %c0_25 = arith.constant 0 : index
    %c20 = arith.constant 20 : index
    %37 = vector.load %arg7[%c0_25, %c20] : memref<128x36xf32, #tpu.memory_space<vmem>>, vector<128x4xf32>
    tpu.vector_store %arg7[%c0_25, %c20], %36 {strides = array<i32>} : memref<128x36xf32, #tpu.memory_space<vmem>>, vector<128x4xf32>,
    %c2_i32 = arith.constant 2 : i32
    %38 = arith.addi %1, %c2_i32 : i32
    %c0_26 = arith.constant 0 : index
    %39 = arith.index_cast %38 : i32 to index
    %c0_27 = arith.constant 0 : index
    %c0_28 = arith.constant 0 : index
    %40 = vector.load %arg2[%c0_26, %39, %c0_27, %c0_28] : memref<1x18x18x4xf32, #tpu.memory_space<vmem>>, vector<1x8x16x4xf32>
    %41 = vector.shape_cast %40 : vector<1x8x16x4xf32> to vector<8x16x4xf32>
    %42 = vector.shape_cast %41 : vector<8x16x4xf32> to vector<128x4xf32>
    %c0_29 = arith.constant 0 : index
    %c24 = arith.constant 24 : index
    %43 = vector.load %arg7[%c0_29, %c24] : memref<128x36xf32, #tpu.memory_space<vmem>>, vector<128x4xf32>
    tpu.vector_store %arg7[%c0_29, %c24], %42 {strides = array<i32>} : memref<128x36xf32, #tpu.memory_space<vmem>>, vector<128x4xf32>,
    %c2_i32_30 = arith.constant 2 : i32
    %44 = arith.addi %1, %c2_i32_30 : i32
    %c0_31 = arith.constant 0 : index
    %45 = arith.index_cast %44 : i32 to index
    %c1_32 = arith.constant 1 : index
    %c0_33 = arith.constant 0 : index
    %46 = vector.load %arg2[%c0_31, %45, %c1_32, %c0_33] : memref<1x18x18x4xf32, #tpu.memory_space<vmem>>, vector<1x8x16x4xf32>
    %47 = vector.shape_cast %46 : vector<1x8x16x4xf32> to vector<8x16x4xf32>
    %48 = vector.shape_cast %47 : vector<8x16x4xf32> to vector<128x4xf32>
    %c0_34 = arith.constant 0 : index
    %c28 = arith.constant 28 : index
    %49 = vector.load %arg7[%c0_34, %c28] : memref<128x36xf32, #tpu.memory_space<vmem>>, vector<128x4xf32>
    tpu.vector_store %arg7[%c0_34, %c28], %48 {strides = array<i32>} : memref<128x36xf32, #tpu.memory_space<vmem>>, vector<128x4xf32>,
    %c2_i32_35 = arith.constant 2 : i32
    %50 = arith.addi %1, %c2_i32_35 : i32
    %c0_36 = arith.constant 0 : index
    %51 = arith.index_cast %50 : i32 to index
    %c2_37 = arith.constant 2 : index
    %c0_38 = arith.constant 0 : index
    %52 = vector.load %arg2[%c0_36, %51, %c2_37, %c0_38] : memref<1x18x18x4xf32, #tpu.memory_space<vmem>>, vector<1x8x16x4xf32>
    %53 = vector.shape_cast %52 : vector<1x8x16x4xf32> to vector<8x16x4xf32>
    %54 = vector.shape_cast %53 : vector<8x16x4xf32> to vector<128x4xf32>
    %c0_39 = arith.constant 0 : index
    %c32 = arith.constant 32 : index
    %55 = vector.load %arg7[%c0_39, %c32] : memref<128x36xf32, #tpu.memory_space<vmem>>, vector<128x4xf32>
    tpu.vector_store %arg7[%c0_39, %c32], %54 {strides = array<i32>} : memref<128x36xf32, #tpu.memory_space<vmem>>, vector<128x4xf32>,
    %c0_40 = arith.constant 0 : index
    %c0_41 = arith.constant 0 : index
    %56 = vector.load %arg7[%c0_40, %c0_41] : memref<128x36xf32, #tpu.memory_space<vmem>>, vector<128x36xf32>
    %57 = arith.truncf %56 : vector<128x36xf32> to vector<128x36xbf16>
    %c0_42 = arith.constant 0 : index
    %c0_43 = arith.constant 0 : index
    %58 = vector.load %arg3[%c0_42, %c0_43] : memref<36x64xbf16, #tpu.memory_space<vmem>>, vector<36x64xbf16>
    %cst = arith.constant dense<0.000000e+00> : vector<128x64xf32>
    %59 = tpu.matmul %57, %58, %cst {dimension_numbers = #tpu.dot_dimension_numbers<[1], [0], [0], [1], [0, 0, 1, 1], [], []>} : vector<128x36xbf16>, vector<36x64xbf16>, vector<128x64xf32> -> vector<128x64xf32>
    %c0_44 = arith.constant 0 : index
    %c0_45 = arith.constant 0 : index
    %60 = vector.load %arg4[%c0_44, %c0_45] : memref<1x64xf32, #tpu.memory_space<vmem>>, vector<1x64xf32>
    %61 = vector.broadcast %60 : vector<1x64xf32> to vector<128x64xf32>
    %62 = arith.addf %59, %61 : vector<128x64xf32>
    %cst_46 = arith.constant 0.000000e+00 : f32
    %63 = vector.broadcast %cst_46 : f32 to vector<128x64xf32>
    %64 = arith.maximumf %62, %63 : vector<128x64xf32>
    %65 = tpu.transpose %64, [1, 0] : vector<128x64xf32> -> vector<64x128xf32>
    %c0_47 = arith.constant 0 : index
    %c0_48 = arith.constant 0 : index
    %c0_49 = arith.constant 0 : index
    %66 = vector.load %arg5[%c0_47, %c0_48, %c0_49] : memref<1x64x128xf32, #tpu.memory_space<vmem>>, vector<1x64x128xf32>
    %67 = vector.shape_cast %66 : vector<1x64x128xf32> to vector<64x128xf32>
    %68 = vector.shape_cast %65 : vector<64x128xf32> to vector<1x64x128xf32>
    tpu.vector_store %arg5[%c0_47, %c0_48, %c0_49], %68 {strides = array<i32>} : memref<1x64x128xf32, #tpu.memory_space<vmem>>, vector<1x64x128xf32>,
    %c0_50 = arith.constant 0 : index
    %c0_51 = arith.constant 0 : index
    %c0_52 = arith.constant 0 : index
    %69 = vector.load %arg6[%c0_50, %c0_51, %c0_52] : memref<1x128x64xf32, #tpu.memory_space<vmem>>, vector<1x128x64xf32>
    %70 = vector.shape_cast %69 : vector<1x128x64xf32> to vector<128x64xf32>
    %71 = vector.shape_cast %64 : vector<128x64xf32> to vector<1x128x64xf32>
    tpu.vector_store %arg6[%c0_50, %c0_51, %c0_52], %71 {strides = array<i32>} : memref<1x128x64xf32, #tpu.memory_space<vmem>>, vector<1x128x64xf32>,
    return
  }
  func.func @transform_0(%arg0: i32, %arg1: i32) -> (i32, i32, i32, i32) {
    %c0_i32 = arith.constant 0 : i32
    %c0_i32_0 = arith.constant 0 : i32
    %c0_i32_1 = arith.constant 0 : i32
    %c0_i32_2 = arith.constant 0 : i32
    return %arg0, %c0_i32, %c0_i32_0, %c0_i32_1 : i32, i32, i32, i32
  }
  func.func @transform_1(%arg0: i32, %arg1: i32) -> (i32, i32) {
    %c0_i32 = arith.constant 0 : i32
    %c0_i32_0 = arith.constant 0 : i32
    %c0_i32_1 = arith.constant 0 : i32
    return %c0_i32, %c0_i32_0 : i32, i32
  }
  func.func @transform_2(%arg0: i32, %arg1: i32) -> (i32, i32) {
    %c0_i32 = arith.constant 0 : i32
    %c0_i32_0 = arith.constant 0 : i32
    %c0_i32_1 = arith.constant 0 : i32
    return %c0_i32, %c0_i32_0 : i32, i32
  }
  func.func @transform_3(%arg0: i32, %arg1: i32) -> (i32, i32, i32) {
    %c0_i32 = arith.constant 0 : i32
    %c0_i32_0 = arith.constant 0 : i32
    return %arg0, %c0_i32, %arg1 : i32, i32, i32
  }
  func.func @transform_4(%arg0: i32, %arg1: i32) -> (i32, i32, i32) {
    %c0_i32 = arith.constant 0 : i32
    %c0_i32_0 = arith.constant 0 : i32
    return %arg0, %arg1, %c0_i32 : i32, i32, i32
  }
}

</mosaic_0001>

<bundles_post_ra>
// kernel: tpu_custom_call.1
= control target key start
LH: loop header
LB: loop body
LE: loop exit
PB: predicated region body
PF: predicated region fallthrough
CT: control target
= control target key end

     0   :  { %10 = vsyncpa [#allocation4], 0  ;;  %s2481_s0 = inlined_call_operand.vmem [shape: f32[2,18,18,4], index: 0, kind: input, shape index: {}]   ;;  %s2482_s1 = inlined_call_operand.vmem [shape: bf16[36,64], index: 1, kind: input, shape index: {}]   ;;  %s2483_s2 = inlined_call_operand.vmem [shape: f32[1,64], index: 2, kind: input, shape index: {}]   ;;  %s2484_s3 = inlined_call_operand.hbm [shape: f32[2,64,256], index: 3, kind: output, shape index: {0}]   ;;  %s2485_s4 = inlined_call_operand.vmem [shape: f32[2,256,64], index: 4, kind: output, shape index: {1}]  }
   0x1   :  { %12 = vsyncpa [#allocation4 + $0x1], 0  ;;  %s1838_s15 = smov 0   ;;  %s1840_s16 = smov 0  }
   0x2   :  { %s1842_s17 = smov 0   ;;  %s1844_s18 = smov 0  }
   0x3   :  { %s1846_s19 = smov 0   ;;  %s1848_s20 = smov 0  }
   0x4   :  { %s1850_s21 = smov 0   ;;  %s1852_s22 = smov 0  }
   0x5 LB: > { %s1453_s23 = sadd.s32 4294967295, %s1800_s22   ;;  %s1454_s24 = sadd.s32 4294967294, %s1800_s22   ;;  %s1800_s22 = sphi %s1852_s22, %s18_s22   ;;  %s1796_s21 = sphi %s1850_s21, %s2497_s21   ;;  %s1792_s20 = sphi %s1848_s20, %s2496_s20   ;;  %s1788_s19 = sphi %s1846_s19, %s2495_s19   ;;  %s1784_s18 = sphi %s1844_s18, %s2494_s18   ;;  %s1780_s17 = sphi %s1842_s17, %s2493_s17   ;;  %s1776_s16 = sphi %s1840_s16, %s2492_s16   ;;  %s1772_s15 = sphi %s1838_s15, %s2491_s15  }
   0x6   : > { %s27_s25 = sadd.s32 1, %s1792_s20  ;;  %s30_s26 = sadd.s32 1, %s1796_s21 }
   0x7   : > { %p28_p0 = scmp.ge.s32.totalorder %s27_s25, 2  ;;  %p117_p1 = scmp.ne.s32.totalorder %s1780_s17, %s1776_s16 }
   0x8   : > { %p118_p2 = scmp.eq.s32.totalorder %s1453_s23, 3  ;;  %p123_p5 = scmp.ne.s32.totalorder %s1776_s16, %s1772_s15 }
   0x9   : > { %s2499_s25 = smov (%p28_p0, %s27_s25), 0  ;;  %s2501_s26 = smov (!%p28_p0, %s30_s26), %s1796_s21 }
   0xa   : > { %s103_s27 = ssub.s32 %s1792_s20, %s2499_s25  ;;  %p1889_p3 = por %p118_p2, %p117_p1 }
   0xb   : > { %p32_p4 = scmp.ge.s32.totalorder %s2501_s26, 2  ;;  %p124_p6 = scmp.eq.s32.totalorder %s1454_s24, 3 }
   0xc   : > { %p1457_p7 = scmp.ge.s32.totalorder %s1800_s22, 1  ;;  %p184_p9 = scmp.lt.s32.totalorder %s1800_s22, 5 }
   0xd   : > { %s2503_s26 = smov (%p32_p4, %s2501_s26), 0  ;;  %p1898_p8 = por %p124_p6, %p123_p5 }
   0xe   : > { %s102_s30 = ssub.s32 %s1796_s21, %s2503_s26  ;;  %s107_s5 = sadd.s32 1, %s1780_s17 }
   0xf   : > { %s104_s6 = sor.u32 %s103_s27, %s102_s30  ;;  %p185_p10 = pnand %p1457_p7, %p184_p9 }
  0x10   : > { %p105_p11 = scmp.eq.s32.totalorder %s104_s6, 0  ;;  %p219_p12 = scmp.lt.s32.totalorder (!%p185_p10), %s1788_s19, 1 }
  0x11   : > { %188 = sbr.rel (%p185_p10) target bundleno = 724 (0x2d4), region = 32  ;;  %s1802_s23 = smov (!%p185_p10), 4  }
  0x12   : > { %s1907_s7 = scalar_select %p105_p11, %s1780_s17, %s107_s5  }
  0x13   : > { %s1464_s9 = smul.u32 (!%p185_p10), 192, %s1784_s18  ;;  %s1803_s24 = smov (!%p185_p10), 8  }
  0x14   : > { %s1804_s27 = smov (!%p185_p10), 12   ;;  %s1805_s30 = smov (!%p185_p10), 16  }
  0x15   : > { %s1806_s5 = smov (!%p185_p10), 20   ;;  %s2486_s6 = smov (!%p185_p10), 24  }
  0x16   : > { %s1911_s8 = scalar_select %p219_p12, %s1788_s19, 1  ;;  %vm254_vm0 = vcmask 31744   ;;  %v1705_v28 = vld [vmem:[%s2482_s1 + $0x10] ss:$0 sps:$4 sm:$0x33]   ;;  %vm1129_vm1 = vcmask 1041408  }
  0x17   : > { %s1808_s11 = smov 28   ;;  %1621 = vmatprep.subr.msk.bf16.mxu0 %vm1129_vm1, %v1705_v28  ;;  %v1131_v31 = vsel %vm1129_vm1, %v1705_v28, 0  ;;  %1622 = vmatprep.subr.msk.bf16.mxu1 %vm1129_vm1, %v1705_v28  ;;  %v1706_v32 = vld [vmem:[%s2482_s1 + $0x8] sm:$0xff]   ;;  %v1707_v33 = vld [vmem:[%s2482_s1] sm:$0xff]   ;;  %s2490_s12 = smov 24   ;;  %vm351_vm2 = vcmask 64544  }
  0x18   : > { %s1623_s10 = smul.u32 432, %s1911_s8  ;;  %1594 = vmatpush3.bf16.msra.mxu0 %v1131_v31  ;;  %1618 = vmatpush3.bf16.msra.mxu1 %v1131_v31  ;;  %vm448_vm3 = vcmask 97344   ;;  %vm548_vm4 = vcmask 130144   ;;  %vm645_vm5 = vcmask 162944   ;;  %vm742_vm6 = vcmask 195744  }
  0x19   : > { %1595 = vmatprep.subr.bf16.mxu0 %v1706_v32  ;;  %1616 = vmatprep.subr.bf16.mxu1 %v1706_v32  ;;  %vm842_vm7 = vcmask 228544   ;;  %vm939_vm8 = vcmask 261344   ;;  %vm1036_vm9 = vcmask 294144   ;;  %vm1104_vm10 = vcmask 293888  }
  0x1a   : > { %s223_s13 = scalar_lea.vmem %s2481_s0, %s1623_s10  ;;  %vm1286_vm11 = vcmask 523264  }
  0x1b   : > { %s1918_s14 = scalar_lea.vmem %s223_s13, %s1464_s9  ;;  %s1810_s13 = smov [#allocation3]  }
  0x1c   : > { %v273_v0 = vld [vmem:[%s1918_s14 + $0x19] sm:$0xff]  ;;  %v271_v1 = vld [vmem:[%s1918_s14 + $0x1] sm:$0xff]  ;;  %v272_v3 = vld [vmem:[%s1918_s14 + $0x9] sm:$0xff]  ;;  %1596 = vmatpush3.bf16.msra.mxu0 %v1706_v32  ;;  %1619 = vmatpush3.bf16.msra.mxu1 %v1706_v32 }
  0x1d   : > { %307 = vrot.lane.b32.xlu1 %v273_v0, %s1802_s23  ;;  %303 = vrot.lane.b32.xlu0 %v271_v1, %s1802_s23  ;;  %v274_v2 = vld [vmem:[%s1918_s14 + $0x21] sm:$0xff]  ;;  %v1467_v5 = vld [vmem:[%s1918_s14 + $0x18] sm:$0xff] }
  0x1e   : > { %v1468_v4 = vld [vmem:[%s1918_s14 + $0x20] sm:$0xff]  ;;  %v1470_v6 = vld [vmem:[%s1918_s14 + $0x38] sm:$0xff]  ;;  %v1469_v7 = vld [vmem:[%s1918_s14 + $0x30] sm:$0xff]  ;;  %257 = vst.msk [vmem:[#allocation2 + $0x10] sm:$0xff] %vm254_vm0, %v1467_v5  ;;  %1597 = vmatprep.subr.bf16.mxu0 %v1707_v33  ;;  %1617 = vmatprep.subr.bf16.mxu1 %v1707_v33 }
  0x1f   : > { %258 = vst.msk [vmem:[#allocation2 + $0x18] sm:$0xff] %vm254_vm0, %v1468_v4  ;;  %260 = vst.msk [vmem:[#allocation2 + $0x28] sm:$0xff] %vm254_vm0, %v1470_v6  ;;  %v369_v8 = vld [vmem:[%s1918_s14 + $0xa] sm:$0xff]  ;;  %v368_v9 = vld [vmem:[%s1918_s14 + $0x2] sm:$0xff] }
  0x20   : > { %259 = vst.msk [vmem:[#allocation2 + $0x20] sm:$0xff] %vm254_vm0, %v1469_v7  ;;  %v1939_v10 = vld [vmem:[%s1918_s14 + $0x50] sm:$0xff]  ;;  %v1942_v11 = vld [vmem:[%s1918_s14 + $0x48] sm:$0xff]  ;;  %v1952_v13 = vld [vmem:[%s1918_s14 + $0x60] sm:$0xff]  ;;  %1598 = vmatpush3.bf16.msra.mxu0 %v1707_v33  ;;  %1620 = vmatpush3.bf16.msra.mxu1 %v1707_v33 }
  0x21   : > { %309 = vrot.lane.b32.xlu1 %v274_v2, %s1802_s23  ;;  %305 = vrot.lane.b32.xlu0 %v272_v3, %s1802_s23  ;;  %262 = vst.msk [vmem:[#allocation2 + $0x38] sm:$0xff] %vm254_vm0, %v1939_v10  ;;  %261 = vst.msk [vmem:[#allocation2 + $0x30] sm:$0xff] %vm254_vm0, %v1942_v11  ;;  %v1949_v12 = vld [vmem:[%s1918_s14 + $0x68] sm:$0xff]  ;;  %v370_v15 = vld [vmem:[%s1918_s14 + $0x1a] sm:$0xff] }
  0x22   : > { %v371_v14 = vld [vmem:[%s1918_s14 + $0x22] sm:$0xff]  ;;  %264 = vst.msk [vmem:[#allocation2 + $0x48] sm:$0xff] %vm254_vm0, %v1949_v12  ;;  %263 = vst.msk [vmem:[#allocation2 + $0x40] sm:$0xff] %vm254_vm0, %v1952_v13  ;;  %v1966_v17 = vld [vmem:[%s1918_s14 + $0x78] sm:$0xff] }
  0x23   : > { %v1963_v16 = vld [vmem:[%s1918_s14 + $0x80] sm:$0xff]  ;;  %265 = vst.msk [vmem:[#allocation2 + $0x50] sm:$0xff] %vm254_vm0, %v1966_v17  ;;  %v239_v19 = vld [vmem:[%s1918_s14 + $0x8] sm:$0xff]  ;;  %v1981_v20 = vld [vmem:[%s1918_s14 + $0x98] sm:$0xff] }
  0x24   : > { %v238_v18 = vld [vmem:[%s1918_s14] sm:$0xff]  ;;  %266 = vst.msk [vmem:[#allocation2 + $0x58] sm:$0xff] %vm254_vm0, %v1963_v16  ;;  %256 = vst.msk [vmem:[#allocation2 + $0x8] sm:$0xff] %vm254_vm0, %v239_v19  ;;  %v1984_v21 = vld [vmem:[%s1918_s14 + $0x90] sm:$0xff] }
  0x25   : > { %402 = vrot.lane.b32.xlu1 %v369_v8, %s1803_s24  ;;  %400 = vrot.lane.b32.xlu0 %v368_v9, %s1803_s24  ;;  %255 = vst.msk [vmem:[#allocation2] sm:$0xff] %vm254_vm0, %v238_v18  ;;  %268 = vst.msk [vmem:[#allocation2 + $0x68] sm:$0xff] %vm254_vm0, %v1981_v20  ;;  %v1486_v22 = vld [vmem:[%s1918_s14 + $0x39] sm:$0xff]  ;;  %v1485_v23 = vld [vmem:[%s1918_s14 + $0x31] sm:$0xff] }
  0x26   : > { %267 = vst.msk [vmem:[#allocation2 + $0x60] sm:$0xff] %vm254_vm0, %v1984_v21  ;;  %v1502_v24 = vld [vmem:[%s1918_s14 + $0x3a] sm:$0xff]  ;;  %v1501_v25 = vld [vmem:[%s1918_s14 + $0x32] sm:$0xff]  ;;  %v2010_v27 = vld [vmem:[%s1918_s14 + $0xa8] sm:$0xff] }
  0x27   : > { %v2007_v26 = vld [vmem:[%s1918_s14 + $0xb0] sm:$0xff]  ;;  %269 = vst.msk [vmem:[#allocation2 + $0x70] sm:$0xff] %vm254_vm0, %v2010_v27  ;;  %v1489_v37 = vld [vmem:[%s1918_s14 + $0x61] sm:$0xff]  ;;  %v2083_v41 = vld [vmem:[%s1918_s14 + $0x79] sm:$0xff] }
  0x28   : > { %270 = vst.msk [vmem:[#allocation2 + $0x78] sm:$0xff] %vm254_vm0, %v2007_v26  ;;  %v1536_v29 = vld [vmem:[%s1918_s14 + $0x51] sm:$0xff]  ;;  %v1535_v30 = vld [vmem:[%s1918_s14 + $0x49] sm:$0xff]  ;;  %v2080_v40 = vld [vmem:[%s1918_s14 + $0x81] sm:$0xff] }
  0x29   : > { %406 = vrot.lane.b32.xlu1 %v371_v14, %s1803_s24  ;;  %404 = vrot.lane.b32.xlu0 %v370_v15, %s1803_s24  ;;  %v1552_v34 = vld [vmem:[%s1918_s14 + $0x52] sm:$0xff]  ;;  %v1551_v35 = vld [vmem:[%s1918_s14 + $0x4a] sm:$0xff] }
  0x2a   : > { %v1490_v36 = vld [vmem:[%s1918_s14 + $0x69] sm:$0xff]  ;;  %v1555_v49 = vld [vmem:[%s1918_s14 + $0x7a] sm:$0xff]  ;;  %v2141_v1 = vld [vmem:[%s1918_s14 + $0x91] sm:$0xff] }
  0x2b   : > { %v1506_v38 = vld [vmem:[%s1918_s14 + $0x6a] sm:$0xff]  ;;  %v1505_v39 = vld [vmem:[%s1918_s14 + $0x62] sm:$0xff]  ;;  %v1560_v32 = vld [vmem:[%s1918_s14 + $0xb2] sm:$0xff] }
  0x2c   : > { %v1556_v48 = vld [vmem:[%s1918_s14 + $0x82] sm:$0xff]  ;;  %v1559_v33 = vld [vmem:[%s1918_s14 + $0xaa] sm:$0xff] }
  0x2d   : > { %502 = vrot.lane.b32.xlu1 %v1468_v4, %s1804_s27  ;;  %500 = vrot.lane.b32.xlu0 %v1467_v5, %s1804_s27 }
  0x31   : > { %506 = vrot.lane.b32.xlu1 %v1470_v6, %s1804_s27  ;;  %504 = vrot.lane.b32.xlu0 %v1469_v7, %s1804_s27 }
  0x35   : > { %599 = vrot.lane.b32.xlu1 %v274_v2, %s1805_s30  ;;  %597 = vrot.lane.b32.xlu0 %v273_v0, %s1805_s30  ;;  %v2138_v0 = vld [vmem:[%s1918_s14 + $0x99] sm:$0xff] }
  0x39   : > { %603 = vrot.lane.b32.xlu1 %v1486_v22, %s1805_s30  ;;  %601 = vrot.lane.b32.xlu0 %v1485_v23, %s1805_s30 }
  0x3d   : > { %696 = vrot.lane.b32.xlu1 %v371_v14, %s1806_s5  ;;  %694 = vrot.lane.b32.xlu0 %v370_v15, %s1806_s5 }
  0x41   : > { %700 = vrot.lane.b32.xlu1 %v1502_v24, %s1806_s5  ;;  %698 = vrot.lane.b32.xlu0 %v1501_v25, %s1806_s5 }
  0x45   : > { %796 = vrot.lane.b32.xlu1 %v1470_v6, %s2486_s6  ;;  %794 = vrot.lane.b32.xlu0 %v1469_v7, %s2486_s6  ;;  %v2154_v6 = vld [vmem:[%s1918_s14 + $0x9a] sm:$0xff]  ;;  %v2157_v7 = vld [vmem:[%s1918_s14 + $0x92] sm:$0xff] }
  0x49   : > { %800 = vrot.lane.b32.xlu1 %v1939_v10, %s2486_s6  ;;  %798 = vrot.lane.b32.xlu0 %v1942_v11, %s2486_s6  ;;  %s1809_s6 = smov 32  }
  0x4d   : > { %893 = vrot.lane.b32.xlu1 %v1486_v22, %s1808_s11  ;;  %891 = vrot.lane.b32.xlu0 %v1485_v23, %s1808_s11 }
  0x51   : > { %897 = vrot.lane.b32.xlu1 %v1536_v29, %s1808_s11  ;;  %895 = vrot.lane.b32.xlu0 %v1535_v30, %s1808_s11 }
  0x55   : > { %990 = vrot.lane.b32.xlu1 %v1502_v24, %s1809_s6  ;;  %988 = vrot.lane.b32.xlu0 %v1501_v25, %s1809_s6 }
  0x59   : > { %313 = vrot.lane.b32.xlu1 %v1486_v22, %s1802_s23  ;;  %311 = vrot.lane.b32.xlu0 %v1485_v23, %s1802_s23 }
  0x5d   : > { %994 = vrot.lane.b32.xlu1 %v1552_v34, %s1809_s6  ;;  %992 = vrot.lane.b32.xlu0 %v1551_v35, %s1809_s6 }
  0x61   : > { %317 = vrot.lane.b32.xlu1 %v1536_v29, %s1802_s23  ;;  %315 = vrot.lane.b32.xlu0 %v1535_v30, %s1802_s23 }
  0x65   : > { %410 = vrot.lane.b32.xlu1 %v1502_v24, %s1803_s24  ;;  %408 = vrot.lane.b32.xlu0 %v1501_v25, %s1803_s24 }
  0x69   : > { %414 = vrot.lane.b32.xlu1 %v1552_v34, %s1803_s24  ;;  %412 = vrot.lane.b32.xlu0 %v1551_v35, %s1803_s24 }
  0x6d   : > { %510 = vrot.lane.b32.xlu1 %v1939_v10, %s1804_s27  ;;  %508 = vrot.lane.b32.xlu0 %v1942_v11, %s1804_s27 }
  0x71   : > { %514 = vrot.lane.b32.xlu1 %v1949_v12, %s1804_s27  ;;  %512 = vrot.lane.b32.xlu0 %v1952_v13, %s1804_s27 }
  0x75   : > { %607 = vrot.lane.b32.xlu1 %v1536_v29, %s1805_s30  ;;  %605 = vrot.lane.b32.xlu0 %v1535_v30, %s1805_s30 }
  0x79   : > { %611 = vrot.lane.b32.xlu1 %v1490_v36, %s1805_s30  ;;  %609 = vrot.lane.b32.xlu0 %v1489_v37, %s1805_s30 }
  0x7d   : > { %704 = vrot.lane.b32.xlu1 %v1552_v34, %s1806_s5  ;;  %702 = vrot.lane.b32.xlu0 %v1551_v35, %s1806_s5 }
  0x81   : > { %708 = vrot.lane.b32.xlu1 %v1506_v38, %s1806_s5  ;;  %706 = vrot.lane.b32.xlu0 %v1505_v39, %s1806_s5 }
  0x85   : > { %804 = vrot.lane.b32.xlu1 %v1949_v12, %s2490_s12  ;;  %802 = vrot.lane.b32.xlu0 %v1952_v13, %s2490_s12 }
  0x89   : > { %808 = vrot.lane.b32.xlu1 %v1963_v16, %s2490_s12  ;;  %806 = vrot.lane.b32.xlu0 %v1966_v17, %s2490_s12 }
  0x8d   : > { %901 = vrot.lane.b32.xlu1 %v1490_v36, %s1808_s11  ;;  %899 = vrot.lane.b32.xlu0 %v1489_v37, %s1808_s11 }
  0x8f   : > { %v308_v42 = vpop.permute.xlu1 %307  ;;  %v304_v43 = vpop.permute.xlu0 %303 }
  0x90   : > { %354 = vst.msk [vmem:[#allocation2 + $0x10] sm:$0xff] %vm351_vm2, %v308_v42  ;;  %352 = vst.msk [vmem:[#allocation2] sm:$0xff] %vm351_vm2, %v304_v43 }
  0x91   : > { %905 = vrot.lane.b32.xlu1 %v2080_v40, %s1808_s11  ;;  %903 = vrot.lane.b32.xlu0 %v2083_v41, %s1808_s11 }
  0x93   : > { %v310_v44 = vpop.permute.xlu1 %309  ;;  %v306_v45 = vpop.permute.xlu0 %305 }
  0x94   : > { %355 = vst.msk [vmem:[#allocation2 + $0x18] sm:$0xff] %vm351_vm2, %v310_v44  ;;  %353 = vst.msk [vmem:[#allocation2 + $0x8] sm:$0xff] %vm351_vm2, %v306_v45  ;;  %v1482_v44 = vld [vmem:[%s1918_s14 + $0xc8] sm:$0xff]  ;;  %v1481_v45 = vld [vmem:[%s1918_s14 + $0xc0] sm:$0xff] }
  0x95   : > { %998 = vrot.lane.b32.xlu1 %v1506_v38, %s1809_s6  ;;  %996 = vrot.lane.b32.xlu0 %v1505_v39, %s1809_s6 }
  0x97   : > { %v403_v46 = vpop.permute.xlu1 %402  ;;  %v401_v47 = vpop.permute.xlu0 %400 }
  0x98   : > { %450 = vst.msk [vmem:[#allocation2 + $0x8] sm:$0xff] %vm448_vm3, %v403_v46  ;;  %449 = vst.msk [vmem:[#allocation2] sm:$0xff] %vm448_vm3, %v401_v47 }
  0x99   : > { %321 = vrot.lane.b32.xlu1 %v1490_v36, %s1802_s23  ;;  %319 = vrot.lane.b32.xlu0 %v1489_v37, %s1802_s23 }
  0x9b   : > { %v407_v50 = vpop.permute.xlu1 %406  ;;  %v405_v51 = vpop.permute.xlu0 %404 }
  0x9c   : > { %452 = vst.msk [vmem:[#allocation2 + $0x18] sm:$0xff] %vm448_vm3, %v407_v50  ;;  %451 = vst.msk [vmem:[#allocation2 + $0x10] sm:$0xff] %vm448_vm3, %v405_v51 }
  0x9d   : > { %1002 = vrot.lane.b32.xlu1 %v1556_v48, %s1809_s6  ;;  %1000 = vrot.lane.b32.xlu0 %v1555_v49, %s1809_s6 }
  0x9f   : > { %v503_v52 = vpop.permute.xlu1 %502  ;;  %v501_v53 = vpop.permute.xlu0 %500 }
  0xa0   : > { %550 = vst.msk [vmem:[#allocation2 + $0x8] sm:$0xff] %vm548_vm4, %v503_v52  ;;  %549 = vst.msk [vmem:[#allocation2] sm:$0xff] %vm548_vm4, %v501_v53 }
  0xa1   : > { %325 = vrot.lane.b32.xlu1 %v2080_v40, %s1802_s23  ;;  %323 = vrot.lane.b32.xlu0 %v2083_v41, %s1802_s23 }
  0xa3   : > { %v507_v54 = vpop.permute.xlu1 %506  ;;  %v505_v55 = vpop.permute.xlu0 %504 }
  0xa4   : > { %552 = vst.msk [vmem:[#allocation2 + $0x18] sm:$0xff] %vm548_vm4, %v507_v54  ;;  %551 = vst.msk [vmem:[#allocation2 + $0x10] sm:$0xff] %vm548_vm4, %v505_v55  ;;  %v1514_v54 = vld [vmem:[%s1918_s14 + $0xca] sm:$0xff]  ;;  %v1513_v55 = vld [vmem:[%s1918_s14 + $0xc2] sm:$0xff] }
  0xa5   : > { %418 = vrot.lane.b32.xlu1 %v1506_v38, %s1803_s24  ;;  %416 = vrot.lane.b32.xlu0 %v1505_v39, %s1803_s24 }
  0xa7   : > { %v600_v56 = vpop.permute.xlu1 %599  ;;  %v598_v57 = vpop.permute.xlu0 %597 }
  0xa8   : > { %647 = vst.msk [vmem:[#allocation2 + $0x8] sm:$0xff] %vm645_vm5, %v600_v56  ;;  %646 = vst.msk [vmem:[#allocation2] sm:$0xff] %vm645_vm5, %v598_v57 }
  0xa9   : > { %422 = vrot.lane.b32.xlu1 %v1556_v48, %s1803_s24  ;;  %420 = vrot.lane.b32.xlu0 %v1555_v49, %s1803_s24 }
  0xab   : > { %v604_v58 = vpop.permute.xlu1 %603  ;;  %v602_v59 = vpop.permute.xlu0 %601 }
  0xac   : > { %649 = vst.msk [vmem:[#allocation2 + $0x18] sm:$0xff] %vm645_vm5, %v604_v58  ;;  %648 = vst.msk [vmem:[#allocation2 + $0x10] sm:$0xff] %vm645_vm5, %v602_v59 }
  0xad   : > { %518 = vrot.lane.b32.xlu1 %v1963_v16, %s1804_s27  ;;  %516 = vrot.lane.b32.xlu0 %v1966_v17, %s1804_s27  ;;  %v2184_v16 = vld [vmem:[%s1918_s14 + $0xb1] sm:$0xff]  ;;  %v2187_v17 = vld [vmem:[%s1918_s14 + $0xa9] sm:$0xff] }
  0xaf   : > { %v697_v60 = vpop.permute.xlu1 %696  ;;  %v695_v61 = vpop.permute.xlu0 %694 }
  0xb0   : > { %744 = vst.msk [vmem:[#allocation2 + $0x8] sm:$0xff] %vm742_vm6, %v697_v60  ;;  %743 = vst.msk [vmem:[#allocation2] sm:$0xff] %vm742_vm6, %v695_v61  ;;  %v1532_v60 = vld [vmem:[%s1918_s14 + $0xe0] sm:$0xff]  ;;  %v1531_v61 = vld [vmem:[%s1918_s14 + $0xd8] sm:$0xff] }
  0xb1   : > { %522 = vrot.lane.b32.xlu1 %v1981_v20, %s1804_s27  ;;  %520 = vrot.lane.b32.xlu0 %v1984_v21, %s1804_s27 }
  0xb3   : > { %v701_v62 = vpop.permute.xlu1 %700  ;;  %v699_v63 = vpop.permute.xlu0 %698 }
  0xb4   : > { %746 = vst.msk [vmem:[#allocation2 + $0x18] sm:$0xff] %vm742_vm6, %v701_v62  ;;  %745 = vst.msk [vmem:[#allocation2 + $0x10] sm:$0xff] %vm742_vm6, %v699_v63 }
  0xb5   : > { %615 = vrot.lane.b32.xlu1 %v2080_v40, %s1805_s30  ;;  %613 = vrot.lane.b32.xlu0 %v2083_v41, %s1805_s30 }
  0xb7   : > { %v797_v2 = vpop.permute.xlu1 %796  ;;  %v795_v3 = vpop.permute.xlu0 %794 }
  0xb8   : > { %844 = vst.msk [vmem:[#allocation2 + $0x8] sm:$0xff] %vm842_vm7, %v797_v2  ;;  %843 = vst.msk [vmem:[#allocation2] sm:$0xff] %vm842_vm7, %v795_v3  ;;  %v1548_v2 = vld [vmem:[%s1918_s14 + $0xe1] sm:$0xff]  ;;  %v1547_v3 = vld [vmem:[%s1918_s14 + $0xd9] sm:$0xff] }
  0xb9   : > { %619 = vrot.lane.b32.xlu1 %v2138_v0, %s1805_s30  ;;  %617 = vrot.lane.b32.xlu0 %v2141_v1, %s1805_s30 }
  0xbb   : > { %v801_v4 = vpop.permute.xlu1 %800  ;;  %v799_v5 = vpop.permute.xlu0 %798 }
  0xbc   : > { %846 = vst.msk [vmem:[#allocation2 + $0x18] sm:$0xff] %vm842_vm7, %v801_v4  ;;  %845 = vst.msk [vmem:[#allocation2 + $0x10] sm:$0xff] %vm842_vm7, %v799_v5 }
  0xbd   : > { %712 = vrot.lane.b32.xlu1 %v1556_v48, %s1806_s5  ;;  %710 = vrot.lane.b32.xlu0 %v1555_v49, %s1806_s5 }
  0xbf   : > { %v894_v8 = vpop.permute.xlu1 %893  ;;  %v892_v9 = vpop.permute.xlu0 %891 }
  0xc0   : > { %941 = vst.msk [vmem:[#allocation2 + $0x8] sm:$0xff] %vm939_vm8, %v894_v8  ;;  %940 = vst.msk [vmem:[#allocation2] sm:$0xff] %vm939_vm8, %v892_v9 }
  0xc1   : > { %716 = vrot.lane.b32.xlu1 %v2154_v6, %s1806_s5  ;;  %714 = vrot.lane.b32.xlu0 %v2157_v7, %s1806_s5 }
  0xc3   : > { %v898_v10 = vpop.permute.xlu1 %897  ;;  %v896_v11 = vpop.permute.xlu0 %895 }
  0xc4   : > { %943 = vst.msk [vmem:[#allocation2 + $0x18] sm:$0xff] %vm939_vm8, %v898_v10  ;;  %942 = vst.msk [vmem:[#allocation2 + $0x10] sm:$0xff] %vm939_vm8, %v896_v11  ;;  %v1564_v11 = vld [vmem:[%s1918_s14 + $0xe2] sm:$0xff] }
  0xc5   : > { %812 = vrot.lane.b32.xlu1 %v1981_v20, %s2490_s12  ;;  %810 = vrot.lane.b32.xlu0 %v1984_v21, %s2490_s12 }
  0xc7   : > { %v991_v12 = vpop.permute.xlu1 %990  ;;  %v989_v13 = vpop.permute.xlu0 %988 }
  0xc8   : > { %1038 = vst.msk [vmem:[#allocation2 + $0x8] sm:$0xff] %vm1036_vm9, %v991_v12  ;;  %1037 = vst.msk [vmem:[#allocation2] sm:$0xff] %vm1036_vm9, %v989_v13  ;;  %v1563_v12 = vld [vmem:[%s1918_s14 + $0xda] sm:$0xff] }
  0xc9   : > { %816 = vrot.lane.b32.xlu1 %v2007_v26, %s2490_s12  ;;  %814 = vrot.lane.b32.xlu0 %v2010_v27, %s2490_s12 }
  0xcb   : > { %v314_v14 = vpop.permute.xlu1 %313  ;;  %v312_v15 = vpop.permute.xlu0 %311 }
  0xcc   : > { %357 = vst.msk [vmem:[#allocation2 + $0x28] sm:$0xff] %vm351_vm2, %v314_v14  ;;  %356 = vst.msk [vmem:[#allocation2 + $0x20] sm:$0xff] %vm351_vm2, %v312_v15 }
  0xcd   : > { %909 = vrot.lane.b32.xlu1 %v2138_v0, %s1808_s11  ;;  %907 = vrot.lane.b32.xlu0 %v2141_v1, %s1808_s11 }
  0xcf   : > { %v995_v18 = vpop.permute.xlu1 %994  ;;  %v993_v19 = vpop.permute.xlu0 %992  ;;  %v1053_v20 = vld [vmem:[#allocation2] sm:$0xff]  ;;  %v1054_v21 = vld [vmem:[#allocation2 + $0x8] sm:$0xff] }
  0xd0   : > { %1040 = vst.msk [vmem:[#allocation2 + $0x18] sm:$0xff] %vm1036_vm9, %v995_v18  ;;  %1039 = vst.msk [vmem:[#allocation2 + $0x10] sm:$0xff] %vm1036_vm9, %v993_v19  ;;  %v1069_v22 = vpack.c.bf16 %v1054_v21, %v1053_v20 }
  0xd1   : > { %913 = vrot.lane.b32.xlu1 %v2184_v16, %s1808_s11  ;;  %911 = vrot.lane.b32.xlu0 %v2187_v17, %s1808_s11 }
  0xd2   : > { %1599 = vmatprep.mubr.msk.bf16.mxu0 %vm1104_vm10, %v1069_v22 }
  0xd3   : > { %v318_v23 = vpop.permute.xlu1 %317  ;;  %v316_v24 = vpop.permute.xlu0 %315 }
  0xd4   : > { %359 = vst.msk [vmem:[#allocation2 + $0x38] sm:$0xff] %vm351_vm2, %v318_v23  ;;  %358 = vst.msk [vmem:[#allocation2 + $0x30] sm:$0xff] %vm351_vm2, %v316_v24 }
  0xd5   : > { %1006 = vrot.lane.b32.xlu1 %v2154_v6, %s1809_s6  ;;  %1004 = vrot.lane.b32.xlu0 %v2157_v7, %s1809_s6 }
  0xd7   : > { %v411_v25 = vpop.permute.xlu1 %410  ;;  %v409_v28 = vpop.permute.xlu0 %408  ;;  %v1055_v29 = vld [vmem:[#allocation2 + $0x10] sm:$0xff]  ;;  %v1056_v30 = vld [vmem:[#allocation2 + $0x18] sm:$0xff] }
  0xd8   : > { %454 = vst.msk [vmem:[#allocation2 + $0x28] sm:$0xff] %vm448_vm3, %v411_v25  ;;  %453 = vst.msk [vmem:[#allocation2 + $0x20] sm:$0xff] %vm448_vm3, %v409_v28  ;;  %v1070_v31 = vpack.c.bf16 %v1056_v30, %v1055_v29 }
  0xd9   : > { %329 = vrot.lane.b32.xlu1 %v2138_v0, %s1802_s23  ;;  %327 = vrot.lane.b32.xlu0 %v2141_v1, %s1802_s23 }
  0xda   : > { %1600 = vmatmul.mubr.msk.bf16.vlgmr.msra.gmra.mxu0 %vm1104_vm10, %v1070_v31 }
  0xdb   : > { %v415_v34 = vpop.permute.xlu1 %414  ;;  %v413_v35 = vpop.permute.xlu0 %412 }
  0xdc   : > { %456 = vst.msk [vmem:[#allocation2 + $0x38] sm:$0xff] %vm448_vm3, %v415_v34  ;;  %455 = vst.msk [vmem:[#allocation2 + $0x30] sm:$0xff] %vm448_vm3, %v413_v35 }
  0xdd   : > { %1010 = vrot.lane.b32.xlu1 %v1560_v32, %s1809_s6  ;;  %1008 = vrot.lane.b32.xlu0 %v1559_v33, %s1809_s6 }
  0xdf   : > { %v511_v36 = vpop.permute.xlu1 %510  ;;  %v509_v37 = vpop.permute.xlu0 %508 }
  0xe0   : > { %554 = vst.msk [vmem:[#allocation2 + $0x28] sm:$0xff] %vm548_vm4, %v511_v36  ;;  %553 = vst.msk [vmem:[#allocation2 + $0x20] sm:$0xff] %vm548_vm4, %v509_v37 }
  0xe1   : > { %333 = vrot.lane.b32.xlu1 %v2184_v16, %s1802_s23  ;;  %331 = vrot.lane.b32.xlu0 %v2187_v17, %s1802_s23  ;;  %s1461_s23 = sshll.u32 %s1911_s8, 5  ;;  %s205_s8 = sand.u32 1, %s1776_s16  }
  0xe2   : > { %s1458_s10 = sshll.u32 %s205_s8, 6 }
  0xe3   : > { %v515_v38 = vpop.permute.xlu1 %514  ;;  %v513_v39 = vpop.permute.xlu0 %512 }
  0xe4   : > { %556 = vst.msk [vmem:[#allocation2 + $0x38] sm:$0xff] %vm548_vm4, %v515_v38  ;;  %555 = vst.msk [vmem:[#allocation2 + $0x30] sm:$0xff] %vm548_vm4, %v513_v39 }
  0xe5   : > { %426 = vrot.lane.b32.xlu1 %v2154_v6, %s1803_s24  ;;  %424 = vrot.lane.b32.xlu0 %v2157_v7, %s1803_s24 }
  0xe7   : > { %v608_v40 = vpop.permute.xlu1 %607  ;;  %v606_v41 = vpop.permute.xlu0 %605 }
  0xe8   : > { %651 = vst.msk [vmem:[#allocation2 + $0x28] sm:$0xff] %vm645_vm5, %v608_v40  ;;  %650 = vst.msk [vmem:[#allocation2 + $0x20] sm:$0xff] %vm645_vm5, %v606_v41 }
  0xe9   : > { %430 = vrot.lane.b32.xlu1 %v1560_v32, %s1803_s24  ;;  %428 = vrot.lane.b32.xlu0 %v1559_v33, %s1803_s24 }
  0xeb   : > { %v612_v42 = vpop.permute.xlu1 %611  ;;  %v610_v43 = vpop.permute.xlu0 %609 }
  0xec   : > { %653 = vst.msk [vmem:[#allocation2 + $0x38] sm:$0xff] %vm645_vm5, %v612_v42  ;;  %652 = vst.msk [vmem:[#allocation2 + $0x30] sm:$0xff] %vm645_vm5, %v610_v43 }
  0xed   : > { %526 = vrot.lane.b32.xlu1 %v2007_v26, %s1804_s27  ;;  %524 = vrot.lane.b32.xlu0 %v2010_v27, %s1804_s27  ;;  %v1498_v26 = vld [vmem:[%s1918_s14 + $0xc9] sm:$0xff]  ;;  %v1497_v27 = vld [vmem:[%s1918_s14 + $0xc1] sm:$0xff]  ;;  %s1460_s14 = sshll.u32 %s1784_s18, 4 }
  0xee   : > { %p227_p13 = scmp.lt.s32.totalorder %s1460_s14, 31 }
  0xef   : > { %v705_v46 = vpop.permute.xlu1 %704  ;;  %v703_v47 = vpop.permute.xlu0 %702 }
  0xf0   : > { %748 = vst.msk [vmem:[#allocation2 + $0x28] sm:$0xff] %vm742_vm6, %v705_v46  ;;  %747 = vst.msk [vmem:[#allocation2 + $0x20] sm:$0xff] %vm742_vm6, %v703_v47  ;;  %s2505_s14 = smov (!%p227_p13, %s1460_s14), 31 }
  0xf1   : > { %530 = vrot.lane.b32.xlu1 %v1482_v44, %s1804_s27  ;;  %528 = vrot.lane.b32.xlu0 %v1481_v45, %s1804_s27  ;;  %s230_s27 = sadd.s32 %s1461_s23, %s2505_s14  ;;  %s1578_s14 = sshll.u32 %s1788_s19, 4 }
  0xf2   : > { %s1324_s23 = sadd.s32 %s1784_s18, %s1578_s14  ;;  %s2429_s19 = scalar_lea.sflag [#allocation4], %s205_s8 }
  0xf3   : > { %v709_v48 = vpop.permute.xlu1 %708  ;;  %v707_v49 = vpop.permute.xlu0 %706 }
  0xf4   : > { %750 = vst.msk [vmem:[#allocation2 + $0x38] sm:$0xff] %vm742_vm6, %v709_v48  ;;  %749 = vst.msk [vmem:[#allocation2 + $0x30] sm:$0xff] %vm742_vm6, %v707_v49 }
  0xf5   : > { %623 = vrot.lane.b32.xlu1 %v2184_v16, %s1805_s30  ;;  %621 = vrot.lane.b32.xlu0 %v2187_v17, %s1805_s30 }
  0xf7   : > { %v805_v50 = vpop.permute.xlu1 %804  ;;  %v803_v51 = vpop.permute.xlu0 %802 }
  0xf8   : > { %848 = vst.msk [vmem:[#allocation2 + $0x28] sm:$0xff] %vm842_vm7, %v805_v50  ;;  %847 = vst.msk [vmem:[#allocation2 + $0x20] sm:$0xff] %vm842_vm7, %v803_v51 }
  0xf9   : > { %627 = vrot.lane.b32.xlu1 %v1498_v26, %s1805_s30  ;;  %625 = vrot.lane.b32.xlu0 %v1497_v27, %s1805_s30  ;;  %s1579_s30 = sshll.u32 %s1324_s23, 7 }
  0xfb   : > { %v809_v52 = vpop.permute.xlu1 %808  ;;  %v807_v53 = vpop.permute.xlu0 %806 }
  0xfc   : > { %850 = vst.msk [vmem:[#allocation2 + $0x38] sm:$0xff] %vm842_vm7, %v809_v52  ;;  %849 = vst.msk [vmem:[#allocation2 + $0x30] sm:$0xff] %vm842_vm7, %v807_v53 }
  0xfd   : > { %720 = vrot.lane.b32.xlu1 %v1560_v32, %s1806_s5  ;;  %718 = vrot.lane.b32.xlu0 %v1559_v33, %s1806_s5 }
  0xff   : > { %v902_v56 = vpop.permute.xlu1 %901  ;;  %v900_v57 = vpop.permute.xlu0 %899 }
 0x100   : > { %945 = vst.msk [vmem:[#allocation2 + $0x28] sm:$0xff] %vm939_vm8, %v902_v56  ;;  %944 = vst.msk [vmem:[#allocation2 + $0x20] sm:$0xff] %vm939_vm8, %v900_v57 }
 0x101   : > { %724 = vrot.lane.b32.xlu1 %v1514_v54, %s1806_s5  ;;  %722 = vrot.lane.b32.xlu0 %v1513_v55, %s1806_s5 }
 0x103   : > { %v906_v58 = vpop.permute.xlu1 %905  ;;  %v904_v59 = vpop.permute.xlu0 %903 }
 0x104   : > { %947 = vst.msk [vmem:[#allocation2 + $0x38] sm:$0xff] %vm939_vm8, %v906_v58  ;;  %946 = vst.msk [vmem:[#allocation2 + $0x30] sm:$0xff] %vm939_vm8, %v904_v59 }
 0x105   : > { %820 = vrot.lane.b32.xlu1 %v1482_v44, %s2490_s12  ;;  %818 = vrot.lane.b32.xlu0 %v1481_v45, %s2490_s12 }
 0x107   : > { %v999_v62 = vpop.permute.xlu1 %998  ;;  %v997_v63 = vpop.permute.xlu0 %996 }
 0x108   : > { %1042 = vst.msk [vmem:[#allocation2 + $0x28] sm:$0xff] %vm1036_vm9, %v999_v62  ;;  %1041 = vst.msk [vmem:[#allocation2 + $0x20] sm:$0xff] %vm1036_vm9, %v997_v63 }
 0x109   : > { %824 = vrot.lane.b32.xlu1 %v1532_v60, %s2490_s12  ;;  %822 = vrot.lane.b32.xlu0 %v1531_v61, %s2490_s12  ;;  %s207_s12 = scalar_lea.vmem [#allocation3], %s1458_s10 }
 0x10b   : > { %v322_v0 = vpop.permute.xlu1 %321  ;;  %v320_v1 = vpop.permute.xlu0 %319 }
 0x10c   : > { %361 = vst.msk [vmem:[#allocation2 + $0x48] sm:$0xff] %vm351_vm2, %v322_v0  ;;  %360 = vst.msk [vmem:[#allocation2 + $0x40] sm:$0xff] %vm351_vm2, %v320_v1 }
 0x10d   : > { %917 = vrot.lane.b32.xlu1 %v1498_v26, %s1808_s11  ;;  %915 = vrot.lane.b32.xlu0 %v1497_v27, %s1808_s11 }
 0x10f   : > { %v1003_v4 = vpop.permute.xlu1 %1002  ;;  %v1001_v5 = vpop.permute.xlu0 %1000  ;;  %v1057_v6 = vld [vmem:[#allocation2 + $0x20] sm:$0xff]  ;;  %v1058_v7 = vld [vmem:[#allocation2 + $0x28] sm:$0xff] }
 0x110   : > { %1044 = vst.msk [vmem:[#allocation2 + $0x38] sm:$0xff] %vm1036_vm9, %v1003_v4  ;;  %1043 = vst.msk [vmem:[#allocation2 + $0x30] sm:$0xff] %vm1036_vm9, %v1001_v5  ;;  %v1071_v8 = vpack.c.bf16 %v1058_v7, %v1057_v6 }
 0x111   : > { %921 = vrot.lane.b32.xlu1 %v1548_v2, %s1808_s11  ;;  %919 = vrot.lane.b32.xlu0 %v1547_v3, %s1808_s11  ;;  %s2427_s11 = scalar_lea.hbm %s2484_s3, %s1579_s30 }
 0x112   : > { %1603 = vmatprep.mubr.msk.bf16.mxu0 %vm1104_vm10, %v1071_v8 }
 0x113   : > { %v326_v9 = vpop.permute.xlu1 %325  ;;  %v324_v10 = vpop.permute.xlu0 %323 }
 0x114   : > { %363 = vst.msk [vmem:[#allocation2 + $0x58] sm:$0xff] %vm351_vm2, %v326_v9  ;;  %362 = vst.msk [vmem:[#allocation2 + $0x50] sm:$0xff] %vm351_vm2, %v324_v10 }
 0x115   : > { %1014 = vrot.lane.b32.xlu1 %v1514_v54, %s1809_s6  ;;  %1012 = vrot.lane.b32.xlu0 %v1513_v55, %s1809_s6 }
 0x117   : > { %v419_v13 = vpop.permute.xlu1 %418  ;;  %v417_v14 = vpop.permute.xlu0 %416  ;;  %v1059_v15 = vld [vmem:[#allocation2 + $0x30] sm:$0xff]  ;;  %v1060_v16 = vld [vmem:[#allocation2 + $0x38] sm:$0xff] }
 0x118   : > { %458 = vst.msk [vmem:[#allocation2 + $0x48] sm:$0xff] %vm448_vm3, %v419_v13  ;;  %457 = vst.msk [vmem:[#allocation2 + $0x40] sm:$0xff] %vm448_vm3, %v417_v14  ;;  %v1072_v17 = vpack.c.bf16 %v1060_v16, %v1059_v15 }
 0x119   : > { %1018 = vrot.lane.b32.xlu1 %v1564_v11, %s1809_s6  ;;  %1016 = vrot.lane.b32.xlu0 %v1563_v12, %s1809_s6  ;;  %s1462_s6 = sshll.u32 %s230_s27, 3  ;;  %s1327_s27 = sshll.u32 %s207_s12, 4  ;;  %s2422_s27 = int_to_ptr.vmem [resolvable:$true] %s1327_s27 }
 0x11a   : > { %1604 = vmatmul.mubr.msk.bf16.gmra.mxu0 %vm1104_vm10, %v1072_v17  ;;  %s2370_s9 = scalar_lea.vmem %s2485_s4, %s1462_s6  ;;  %s1708_s18 = scalar_lea.vmem %s2422_s27, 1024 }
 0x11b   : > { %v423_v18 = vpop.permute.xlu1 %422  ;;  %v421_v19 = vpop.permute.xlu0 %420  ;;  %p1709_p0 = scmp.ne.s32.totalorder %s2422_s27, %s1708_s18 }
 0x11c   : > { %460 = vst.msk [vmem:[#allocation2 + $0x58] sm:$0xff] %vm448_vm3, %v423_v18  ;;  %459 = vst.msk [vmem:[#allocation2 + $0x50] sm:$0xff] %vm448_vm3, %v421_v19 }
 0x11d   : > { %p1710_p1 = pnand %p1709_p0, %p1889_p3 }
 0x11f   : > { %v519_v20 = vpop.permute.xlu1 %518  ;;  %v517_v21 = vpop.permute.xlu0 %516  ;;  %p1711_p2 = pneg %p1710_p1 }
 0x120   : > { %558 = vst.msk [vmem:[#allocation2 + $0x48] sm:$0xff] %vm548_vm4, %v519_v20  ;;  %557 = vst.msk [vmem:[#allocation2 + $0x40] sm:$0xff] %vm548_vm4, %v517_v21 }
 0x123   : > { %v523_v22 = vpop.permute.xlu1 %522  ;;  %v521_v23 = vpop.permute.xlu0 %520 }
 0x124   : > { %560 = vst.msk [vmem:[#allocation2 + $0x58] sm:$0xff] %vm548_vm4, %v523_v22  ;;  %559 = vst.msk [vmem:[#allocation2 + $0x50] sm:$0xff] %vm548_vm4, %v521_v23 }
 0x127   : > { %v616_v24 = vpop.permute.xlu1 %615  ;;  %v614_v25 = vpop.permute.xlu0 %613 }
 0x128   : > { %655 = vst.msk [vmem:[#allocation2 + $0x48] sm:$0xff] %vm645_vm5, %v616_v24  ;;  %654 = vst.msk [vmem:[#allocation2 + $0x40] sm:$0xff] %vm645_vm5, %v614_v25  ;;  %v2364_v24 = vld [vmem:[%s2483_s2] ss:$0 sm:$0xff] }
 0x12b   : > { %v620_v28 = vpop.permute.xlu1 %619  ;;  %v618_v29 = vpop.permute.xlu0 %617 }
 0x12c   : > { %657 = vst.msk [vmem:[#allocation2 + $0x58] sm:$0xff] %vm645_vm5, %v620_v28  ;;  %656 = vst.msk [vmem:[#allocation2 + $0x50] sm:$0xff] %vm645_vm5, %v618_v29 }
 0x12f   : > { %v713_v30 = vpop.permute.xlu1 %712  ;;  %v711_v31 = vpop.permute.xlu0 %710 }
 0x130   : > { %752 = vst.msk [vmem:[#allocation2 + $0x48] sm:$0xff] %vm742_vm6, %v713_v30  ;;  %751 = vst.msk [vmem:[#allocation2 + $0x40] sm:$0xff] %vm742_vm6, %v711_v31 }
 0x133   : > { %v717_v32 = vpop.permute.xlu1 %716  ;;  %v715_v33 = vpop.permute.xlu0 %714 }
 0x134   : > { %754 = vst.msk [vmem:[#allocation2 + $0x58] sm:$0xff] %vm742_vm6, %v717_v32  ;;  %753 = vst.msk [vmem:[#allocation2 + $0x50] sm:$0xff] %vm742_vm6, %v715_v33 }
 0x137   : > { %v813_v34 = vpop.permute.xlu1 %812  ;;  %v811_v35 = vpop.permute.xlu0 %810 }
 0x138   : > { %852 = vst.msk [vmem:[#allocation2 + $0x48] sm:$0xff] %vm842_vm7, %v813_v34  ;;  %851 = vst.msk [vmem:[#allocation2 + $0x40] sm:$0xff] %vm842_vm7, %v811_v35 }
 0x13b   : > { %v817_v36 = vpop.permute.xlu1 %816  ;;  %v815_v37 = vpop.permute.xlu0 %814 }
 0x13c   : > { %854 = vst.msk [vmem:[#allocation2 + $0x58] sm:$0xff] %vm842_vm7, %v817_v36  ;;  %853 = vst.msk [vmem:[#allocation2 + $0x50] sm:$0xff] %vm842_vm7, %v815_v37 }
 0x13f   : > { %v910_v38 = vpop.permute.xlu1 %909  ;;  %v908_v39 = vpop.permute.xlu0 %907 }
 0x140   : > { %949 = vst.msk [vmem:[#allocation2 + $0x48] sm:$0xff] %vm939_vm8, %v910_v38  ;;  %948 = vst.msk [vmem:[#allocation2 + $0x40] sm:$0xff] %vm939_vm8, %v908_v39 }
 0x143   : > { %v914_v40 = vpop.permute.xlu1 %913  ;;  %v912_v41 = vpop.permute.xlu0 %911 }
 0x144   : > { %951 = vst.msk [vmem:[#allocation2 + $0x58] sm:$0xff] %vm939_vm8, %v914_v40  ;;  %950 = vst.msk [vmem:[#allocation2 + $0x50] sm:$0xff] %vm939_vm8, %v912_v41 }
 0x147   : > { %v1007_v42 = vpop.permute.xlu1 %1006  ;;  %v1005_v43 = vpop.permute.xlu0 %1004 }
 0x148   : > { %1046 = vst.msk [vmem:[#allocation2 + $0x48] sm:$0xff] %vm1036_vm9, %v1007_v42  ;;  %1045 = vst.msk [vmem:[#allocation2 + $0x40] sm:$0xff] %vm1036_vm9, %v1005_v43 }
 0x14b   : > { %v330_v44 = vpop.permute.xlu1 %329  ;;  %v328_v45 = vpop.permute.xlu0 %327 }
 0x14c   : > { %365 = vst.msk [vmem:[#allocation2 + $0x68] sm:$0xff] %vm351_vm2, %v330_v44  ;;  %364 = vst.msk [vmem:[#allocation2 + $0x60] sm:$0xff] %vm351_vm2, %v328_v45 }
 0x14f   : > { %v1011_v46 = vpop.permute.xlu1 %1010  ;;  %v1009_v47 = vpop.permute.xlu0 %1008  ;;  %v1061_v48 = vld [vmem:[#allocation2 + $0x40] sm:$0xff]  ;;  %v1062_v49 = vld [vmem:[#allocation2 + $0x48] sm:$0xff] }
 0x150   : > { %1048 = vst.msk [vmem:[#allocation2 + $0x58] sm:$0xff] %vm1036_vm9, %v1011_v46  ;;  %1047 = vst.msk [vmem:[#allocation2 + $0x50] sm:$0xff] %vm1036_vm9, %v1009_v47  ;;  %v1073_v26 = vpack.c.bf16 %v1062_v49, %v1061_v48 }
 0x152   : > { %1607 = vmatprep.mubr.msk.bf16.mxu1 %vm1104_vm10, %v1073_v26 }
 0x153   : > { %v334_v27 = vpop.permute.xlu1 %333  ;;  %v332_v50 = vpop.permute.xlu0 %331 }
 0x154   : > { %367 = vst.msk [vmem:[#allocation2 + $0x78] sm:$0xff] %vm351_vm2, %v334_v27  ;;  %366 = vst.msk [vmem:[#allocation2 + $0x70] sm:$0xff] %vm351_vm2, %v332_v50 }
 0x157   : > { %v427_v51 = vpop.permute.xlu1 %426  ;;  %v425_v52 = vpop.permute.xlu0 %424  ;;  %v1063_v53 = vld [vmem:[#allocation2 + $0x50] sm:$0xff]  ;;  %v1064_v54 = vld [vmem:[#allocation2 + $0x58] sm:$0xff] }
 0x158   : > { %462 = vst.msk [vmem:[#allocation2 + $0x68] sm:$0xff] %vm448_vm3, %v427_v51  ;;  %461 = vst.msk [vmem:[#allocation2 + $0x60] sm:$0xff] %vm448_vm3, %v425_v52  ;;  %v1074_v55 = vpack.c.bf16 %v1064_v54, %v1063_v53 }
 0x15a   : > { %1608 = vmatmul.mubr.msk.bf16.vlgmr.msra.gmra.mxu1 %vm1104_vm10, %v1074_v55 }
 0x15b   : > { %v431_v56 = vpop.permute.xlu1 %430  ;;  %v429_v57 = vpop.permute.xlu0 %428 }
 0x15c   : > { %464 = vst.msk [vmem:[#allocation2 + $0x78] sm:$0xff] %vm448_vm3, %v431_v56  ;;  %463 = vst.msk [vmem:[#allocation2 + $0x70] sm:$0xff] %vm448_vm3, %v429_v57 }
 0x15f   : > { %v527_v58 = vpop.permute.xlu1 %526  ;;  %v525_v59 = vpop.permute.xlu0 %524 }
 0x160   : > { %562 = vst.msk [vmem:[#allocation2 + $0x68] sm:$0xff] %vm548_vm4, %v527_v58  ;;  %561 = vst.msk [vmem:[#allocation2 + $0x60] sm:$0xff] %vm548_vm4, %v525_v59 }
 0x163   : > { %v531_v60 = vpop.permute.xlu1 %530  ;;  %v529_v61 = vpop.permute.xlu0 %528 }
 0x164   : > { %564 = vst.msk [vmem:[#allocation2 + $0x78] sm:$0xff] %vm548_vm4, %v531_v60  ;;  %563 = vst.msk [vmem:[#allocation2 + $0x70] sm:$0xff] %vm548_vm4, %v529_v61 }
 0x167   : > { %v624_v62 = vpop.permute.xlu1 %623  ;;  %v622_v63 = vpop.permute.xlu0 %621 }
 0x168   : > { %659 = vst.msk [vmem:[#allocation2 + $0x68] sm:$0xff] %vm645_vm5, %v624_v62  ;;  %658 = vst.msk [vmem:[#allocation2 + $0x60] sm:$0xff] %vm645_vm5, %v622_v63 }
 0x16b   : > { %v628_v0 = vpop.permute.xlu1 %627  ;;  %v626_v1 = vpop.permute.xlu0 %625 }
 0x16c   : > { %661 = vst.msk [vmem:[#allocation2 + $0x78] sm:$0xff] %vm645_vm5, %v628_v0  ;;  %660 = vst.msk [vmem:[#allocation2 + $0x70] sm:$0xff] %vm645_vm5, %v626_v1 }
 0x16f   : > { %v721_v2 = vpop.permute.xlu1 %720  ;;  %v719_v3 = vpop.permute.xlu0 %718 }
 0x170   : > { %756 = vst.msk [vmem:[#allocation2 + $0x68] sm:$0xff] %vm742_vm6, %v721_v2  ;;  %755 = vst.msk [vmem:[#allocation2 + $0x60] sm:$0xff] %vm742_vm6, %v719_v3 }
 0x173   : > { %v725_v4 = vpop.permute.xlu1 %724  ;;  %v723_v5 = vpop.permute.xlu0 %722 }
 0x174   : > { %758 = vst.msk [vmem:[#allocation2 + $0x78] sm:$0xff] %vm742_vm6, %v725_v4  ;;  %757 = vst.msk [vmem:[#allocation2 + $0x70] sm:$0xff] %vm742_vm6, %v723_v5 }
 0x177   : > { %v821_v6 = vpop.permute.xlu1 %820  ;;  %v819_v7 = vpop.permute.xlu0 %818 }
 0x178   : > { %856 = vst.msk [vmem:[#allocation2 + $0x68] sm:$0xff] %vm842_vm7, %v821_v6  ;;  %855 = vst.msk [vmem:[#allocation2 + $0x60] sm:$0xff] %vm842_vm7, %v819_v7 }
 0x17b   : > { %v825_v8 = vpop.permute.xlu1 %824  ;;  %v823_v9 = vpop.permute.xlu0 %822 }
 0x17c   : > { %858 = vst.msk [vmem:[#allocation2 + $0x78] sm:$0xff] %vm842_vm7, %v825_v8  ;;  %857 = vst.msk [vmem:[#allocation2 + $0x70] sm:$0xff] %vm842_vm7, %v823_v9 }
 0x17f   : > { %v918_v10 = vpop.permute.xlu1 %917  ;;  %v916_v11 = vpop.permute.xlu0 %915 }
 0x180   : > { %953 = vst.msk [vmem:[#allocation2 + $0x68] sm:$0xff] %vm939_vm8, %v918_v10  ;;  %952 = vst.msk [vmem:[#allocation2 + $0x60] sm:$0xff] %vm939_vm8, %v916_v11 }
 0x183   : > { %v922_v12 = vpop.permute.xlu1 %921  ;;  %v920_v13 = vpop.permute.xlu0 %919 }
 0x184   : > { %955 = vst.msk [vmem:[#allocation2 + $0x78] sm:$0xff] %vm939_vm8, %v922_v12  ;;  %954 = vst.msk [vmem:[#allocation2 + $0x70] sm:$0xff] %vm939_vm8, %v920_v13 }
 0x187   : > { %v1015_v14 = vpop.permute.xlu1 %1014  ;;  %v1013_v15 = vpop.permute.xlu0 %1012 }
 0x188   : > { %1050 = vst.msk [vmem:[#allocation2 + $0x68] sm:$0xff] %vm1036_vm9, %v1015_v14  ;;  %1049 = vst.msk [vmem:[#allocation2 + $0x60] sm:$0xff] %vm1036_vm9, %v1013_v15 }
 0x18b   : > { %v1019_v16 = vpop.permute.xlu1 %1018  ;;  %v1017_v17 = vpop.permute.xlu0 %1016 }
 0x18c   : > { %1052 = vst.msk [vmem:[#allocation2 + $0x78] sm:$0xff] %vm1036_vm9, %v1019_v16  ;;  %1051 = vst.msk [vmem:[#allocation2 + $0x70] sm:$0xff] %vm1036_vm9, %v1017_v17 }
 0x18f   : > { %v1065_v18 = vld [vmem:[#allocation2 + $0x60] sm:$0xff]  ;;  %v1066_v19 = vld [vmem:[#allocation2 + $0x68] sm:$0xff] }
 0x190   : > { %v1075_v20 = vpack.c.bf16 %v1066_v19, %v1065_v18 }
 0x192   : > { %1611 = vmatprep.mubr.msk.bf16.mxu1 %vm1104_vm10, %v1075_v20 }
 0x193   : > { %v1067_v21 = vld [vmem:[#allocation2 + $0x70] sm:$0xff]  ;;  %v1068_v22 = vld [vmem:[#allocation2 + $0x78] sm:$0xff] }
 0x194   : > { %v1076_v23 = vpack.c.bf16 %v1068_v22, %v1067_v21 }
 0x196   : > { %1612 = vmatmul.mubr.msk.bf16.gmra.mxu1 %vm1104_vm10, %v1076_v23 }
 0x19a   : > { %v1601_v25 = vpop.f32.mrf.mxu0 }
 0x19b   : > { %v1176_v28 = vadd.f32 %v1601_v25, %v2364_v24 }
 0x19c   : > { %v1167_v29 = vpop.f32.mrf.mxu0 }
 0x19d   : > { %v1232_v30 = vmax.f32 %v1176_v28, 0.0  ;;  %v1168_v31 = vadd.f32 %v2364_v24, %v1167_v29 }
 0x19e   : > { %v1602_v32 = vpop.f32.mrf.mxu0 }
 0x19f   : > { %1289 = vst.msk [vmem:[%s2370_s9 + $0x10] sm:$0xff] %vm1286_vm11, %v1232_v30  ;;  %v1230_v33 = vmax.f32 %v1168_v31, 0.0  ;;  %v1179_v34 = vadd.f32 %v1602_v32, %v2364_v24 }
 0x1a0   : > { %v1170_v35 = vpop.f32.mrf.mxu0 }
 0x1a1   : > { %1287 = vst.msk [vmem:[%s2370_s9] sm:$0xff] %vm1286_vm11, %v1230_v33  ;;  %v1233_v36 = vmax.f32 %v1179_v34, 0.0  ;;  %v1171_v37 = vadd.f32 %v2364_v24, %v1170_v35  ;;  %1246 = vxpose.xlu0.b32.start [1/16] (narrow) %v1230_v33, 64 }
 0x1a3   : > { %1290 = vst.msk [vmem:[%s2370_s9 + $0x18] sm:$0xff] %vm1286_vm11, %v1233_v36  ;;  %v1231_v38 = vmax.f32 %v1171_v37, 0.0 }
 0x1a5   : > { %1288 = vst.msk [vmem:[%s2370_s9 + $0x8] sm:$0xff] %vm1286_vm11, %v1231_v38  ;;  %1247 = vxpose.xlu0.b32.cont [2/16] (narrow) %v1231_v38, 64 }
 0x1a9   : > { %1248 = vxpose.xlu0.b32.cont [3/16] (narrow) %v1232_v30, 64 }
 0x1ad   : > { %1249 = vxpose.xlu0.b32.cont [4/16] (narrow) %v1233_v36, 64 }
 0x1da   : > { %v1605_v39 = vpop.f32.mrf.mxu0 }
 0x1db   : > { %v1192_v40 = vadd.f32 %v1605_v39, %v2364_v24 }
 0x1dc   : > { %v1183_v41 = vpop.f32.mrf.mxu0 }
 0x1dd   : > { %v1236_v42 = vmax.f32 %v1192_v40, 0.0  ;;  %v1184_v43 = vadd.f32 %v2364_v24, %v1183_v41 }
 0x1de   : > { %v1606_v44 = vpop.f32.mrf.mxu0 }
 0x1df   : > { %1293 = vst.msk [vmem:[%s2370_s9 + $0x30] sm:$0xff] %vm1286_vm11, %v1236_v42  ;;  %v1234_v45 = vmax.f32 %v1184_v43, 0.0  ;;  %v1195_v46 = vadd.f32 %v1606_v44, %v2364_v24 }
 0x1e0   : > { %v1186_v47 = vpop.f32.mrf.mxu0 }
 0x1e1   : > { %1291 = vst.msk [vmem:[%s2370_s9 + $0x20] sm:$0xff] %vm1286_vm11, %v1234_v45  ;;  %v1237_v48 = vmax.f32 %v1195_v46, 0.0  ;;  %v1187_v49 = vadd.f32 %v2364_v24, %v1186_v47  ;;  %1250 = vxpose.xlu0.b32.cont [5/16] (narrow) %v1234_v45, 64 }
 0x1e3   : > { %1294 = vst.msk [vmem:[%s2370_s9 + $0x38] sm:$0xff] %vm1286_vm11, %v1237_v48  ;;  %v1235_v26 = vmax.f32 %v1187_v49, 0.0 }
 0x1e5   : > { %1292 = vst.msk [vmem:[%s2370_s9 + $0x28] sm:$0xff] %vm1286_vm11, %v1235_v26  ;;  %1251 = vxpose.xlu0.b32.cont [6/16] (narrow) %v1235_v26, 64 }
 0x1e9   : > { %1252 = vxpose.xlu0.b32.cont [7/16] (narrow) %v1236_v42, 64 }
 0x1ed   : > { %1253 = vxpose.xlu0.b32.cont [8/16] (narrow) %v1237_v48, 64 }
 0x21a   : > { %v1609_v27 = vpop.f32.mrf.mxu1 }
 0x21b   : > { %v1208_v50 = vadd.f32 %v1609_v27, %v2364_v24 }
 0x21c   : > { %v1199_v51 = vpop.f32.mrf.mxu1 }
 0x21d   : > { %v1240_v52 = vmax.f32 %v1208_v50, 0.0  ;;  %v1200_v53 = vadd.f32 %v2364_v24, %v1199_v51 }
 0x21e   : > { %v1610_v54 = vpop.f32.mrf.mxu1 }
 0x21f   : > { %1297 = vst.msk [vmem:[%s2370_s9 + $0x50] sm:$0xff] %vm1286_vm11, %v1240_v52  ;;  %v1238_v55 = vmax.f32 %v1200_v53, 0.0  ;;  %v1211_v56 = vadd.f32 %v1610_v54, %v2364_v24 }
 0x220   : > { %v1202_v57 = vpop.f32.mrf.mxu1 }
 0x221   : > { %1295 = vst.msk [vmem:[%s2370_s9 + $0x40] sm:$0xff] %vm1286_vm11, %v1238_v55  ;;  %v1241_v58 = vmax.f32 %v1211_v56, 0.0  ;;  %v1203_v59 = vadd.f32 %v2364_v24, %v1202_v57  ;;  %1254 = vxpose.xlu0.b32.cont [9/16] (narrow) %v1238_v55, 64 }
 0x223   : > { %1298 = vst.msk [vmem:[%s2370_s9 + $0x58] sm:$0xff] %vm1286_vm11, %v1241_v58  ;;  %v1239_v60 = vmax.f32 %v1203_v59, 0.0 }
 0x225   : > { %1296 = vst.msk [vmem:[%s2370_s9 + $0x48] sm:$0xff] %vm1286_vm11, %v1239_v60  ;;  %1255 = vxpose.xlu0.b32.cont [10/16] (narrow) %v1239_v60, 64 }
 0x229   : > { %1256 = vxpose.xlu0.b32.cont [11/16] (narrow) %v1240_v52, 64 }
 0x22d   : > { %1257 = vxpose.xlu0.b32.cont [12/16] (narrow) %v1241_v58, 64 }
 0x256   : > { %v1613_v61 = vpop.f32.mrf.mxu1 }
 0x257   : > { %v1224_v62 = vadd.f32 %v1613_v61, %v2364_v24 }
 0x258   : > { %v1215_v63 = vpop.f32.mrf.mxu1 }
 0x259   : > { %v1244_v0 = vmax.f32 %v1224_v62, 0.0  ;;  %v1216_v1 = vadd.f32 %v2364_v24, %v1215_v63 }
 0x25a   : > { %v1614_v2 = vpop.f32.mrf.mxu1 }
 0x25b   : > { %1301 = vst.msk [vmem:[%s2370_s9 + $0x70] sm:$0xff] %vm1286_vm11, %v1244_v0  ;;  %v1242_v3 = vmax.f32 %v1216_v1, 0.0  ;;  %v1227_v4 = vadd.f32 %v1614_v2, %v2364_v24 }
 0x25c   : > { %v1218_v5 = vpop.f32.mrf.mxu1 }
 0x25d   : > { %1299 = vst.msk [vmem:[%s2370_s9 + $0x60] sm:$0xff] %vm1286_vm11, %v1242_v3  ;;  %v1245_v6 = vmax.f32 %v1227_v4, 0.0  ;;  %v1219_v7 = vadd.f32 %v2364_v24, %v1218_v5  ;;  %1258 = vxpose.xlu0.b32.cont [13/16] (narrow) %v1242_v3, 64 }
 0x25f   : > { %1302 = vst.msk [vmem:[%s2370_s9 + $0x78] sm:$0xff] %vm1286_vm11, %v1245_v6  ;;  %v1243_v8 = vmax.f32 %v1219_v7, 0.0 }
 0x261   : > { %1300 = vst.msk [vmem:[%s2370_s9 + $0x68] sm:$0xff] %vm1286_vm11, %v1243_v8  ;;  %1259 = vxpose.xlu0.b32.cont [14/16] (narrow) %v1243_v8, 64  ;;  %s1712_s9 = sshll.u32 %s1810_s13, 4  ;;  %s1713_s9 = int_to_ptr.vmem [resolvable:$false] %s1712_s9 }
 0x262   : > { %s1714_s10 = scalar_lea.vmem %s1713_s9, 2048  ;;  %p1715_p4 = scmp.lt.s32.totalorder %s2422_s27, %s1713_s9 }
 0x263   : > { %p1716_p5 = scmp.lt.s32.totalorder %s1714_s10, %s1708_s18 }
 0x265   : > { %1260 = vxpose.xlu0.b32.cont [15/16] (narrow) %v1244_v0, 64  ;;  %p1717_p6 = por %p1716_p5, %p1715_p4 }
 0x267   : > { %p1718_p7 = pnand %p1717_p6, %p1711_p2 }
 0x269   : > { %1261 = vxpose.xlu0.b32.end [16/16] (narrow) %v1245_v6, 64 }
 0x2a9   : > { %v1262_v9 = vpop.trf.xlu0 }
 0x2aa   : > { %1278 = vst [vmem:[%s207_s12] sm:$0xff] %v1262_v9 }
 0x2ad   : > { %v1263_v10 = vpop.trf.xlu0 }
 0x2ae   : > { %1279 = vst [vmem:[%s207_s12 + $0x8] sm:$0xff] %v1263_v10 }
 0x2b1   : > { %v1264_v11 = vpop.trf.xlu0 }
 0x2b2   : > { %1280 = vst [vmem:[%s207_s12 + $0x10] sm:$0xff] %v1264_v11 }
 0x2b5   : > { %v1265_v12 = vpop.trf.xlu0 }
 0x2b6   : > { %1281 = vst [vmem:[%s207_s12 + $0x18] sm:$0xff] %v1265_v12 }
 0x2b9   : > { %v1266_v13 = vpop.trf.xlu0 }
 0x2ba   : > { %1282 = vst [vmem:[%s207_s12 + $0x20] sm:$0xff] %v1266_v13 }
 0x2bd   : > { %v1267_v14 = vpop.trf.xlu0 }
 0x2be   : > { %1283 = vst [vmem:[%s207_s12 + $0x28] sm:$0xff] %v1267_v14 }
 0x2c1   : > { %v1268_v15 = vpop.trf.xlu0 }
 0x2c2   : > { %1284 = vst [vmem:[%s207_s12 + $0x30] sm:$0xff] %v1268_v15 }
 0x2c5   : > { %v1269_v16 = vpop.trf.xlu0 }
 0x2c6   : > { %1285 = vst [vmem:[%s207_s12 + $0x38] sm:$0xff] %v1269_v16 }
 0x2c7   : > { %1721 = shalt.err (!%p1718_p7)
}
 0x2c8   : > { %s1722_s8 = scalar_lea.hbm %s2427_s11, 1024  ;;  %s1726_s23 = scalar_lea.hbm %s2484_s3, 4096 }
 0x2c9   : > { %p1723_p9 = scmp.ne.s32.totalorder %s2427_s11, %s1722_s8  ;;  %p1727_p12 = scmp.lt.s32.totalorder %s2427_s11, %s2484_s3 }
 0x2ca   : > { %p1728_p13 = scmp.lt.s32.totalorder %s1726_s23, %s1722_s8 }
 0x2cb   : > { %p1724_p10 = pnand %p1723_p9, %p1889_p3 }
 0x2cc   : > { %p1729_p0 = por %p1728_p13, %p1727_p12 }
 0x2cd   : > { %p1725_p11 = pneg %p1724_p10 }
 0x2cf   : > { %p1730_p1 = pnand %p1729_p0, %p1725_p11 }
 0x2d1   : > { %1733 = shalt.err (!%p1730_p1)
}
 0x2d2   : > { %s1811_s6 = smov 128   ;;  %s1812_s18 = smov 256  }
 0x2d3   : > { %1624 = dma.vmem_to_hbm [thread:$0]  (%p1889_p3), %s2422_s27, 1024, %s2427_s11, %s2429_s19, %s1811_s6, %s1812_s18, %s1803_s24  }
 0x2d4 PF: > { %p1630_p2 = scmp.ge.s32.totalorder %s1800_s22, 2  ;;  %s1346_s13 = sand.u32 1, %s1772_s15  }
 0x2d5   : > { %s1347_s9 = scalar_lea.sflag [#allocation4], %s1346_s13 }
 0x2d6   : > { %p1627_p4 = pnand %p1630_p2, %p1898_p8 }
 0x2d8   : > { %p1628_p5 = pneg %p1627_p4 }
 0x2da   : > { %1767 = dma.done.wait (%p1628_p5), %s1347_s9, 1024  }
 0x2db   : > { %1769 = vsyncadd (%p1628_p5), %s1347_s9, 4294966272  ;;  %s18_s22 = sadd.s32 1, %s1800_s22   ;;  %s2491_s15 = smov %s1776_s16 }
 0x2dc   : > { %p15_p6 = scmp.ge.s32.totalorder %s18_s22, 6   ;;  %s2492_s16 = smov %s1780_s17 }
 0x2dd   : > { %s2493_s17 = smov %s1907_s7  ;;  %s2494_s18 = smov %s1792_s20 }
 0x2de   : > { %s2495_s19 = smov %s1796_s21  ;;  %s2496_s20 = smov %s2499_s25 }
 0x2df   : > { %s2497_s21 = smov %s2503_s26  ;;  %17 = sbr.rel (!%p15_p6) target bundleno = 5 (0x5), region = 82 }
 0x2e4   :  { %1364 = vsyncpa [#allocation4], 1 }
 0x2e5   :  { %1366 = vsyncpa [#allocation4 + $0x1], 1 }

</bundles_post_ra>
